<compile_context>
chip_gen: v7x
topology: tpu7x:2x2x1
jax: 0.10.0
libtpu: 0.0.40
codegen_flags: <defaults>
</compile_context>

<pallas_src>
import jax
import jax.numpy as jnp
from jax.experimental import pallas as pl
from jax.experimental.pallas import tpu as pltpu


def _cdiv(a, b):
    return -(-a // b)


# ---------------------------------------------------------------------------
# Kernel bodies.
#   x_ref     : [TN, F]    node features (col 0 = op id as float), any float dtype
#   lut_ref   : [1, n_ops] fused per-op score table (emb @ wopm + bopm)
#   wpack_ref : [2, F]     row 0 = fused shape weights, row 1 = fused attr weights
#                          (zeros on all lanes not belonging to that branch)
#   bpack_ref : [1, 2]     fused (shape, attr) biases
# ---------------------------------------------------------------------------
def _scores(x_ref, lut_ref, wpack_ref, bpack_ref):
    """abs([op | shape | attr]) scores for one row tile -> [TN, 3] f32."""
    x = x_ref[...].astype(jnp.float32)        # upcast (if any) happens in-kernel
    tn = x.shape[0]
    n_ops = lut_ref.shape[1]

    # op branch: Embedding + op_mlp folded into a LUT; lookup is a VPU
    # compare/select + lane reduce over the n_ops live lanes (no gather, no MXU).
    # NOTE: out-of-range op ids silently give a 0 score (PyTorch Embedding raises).
    ops = x[:, 0:1].astype(jnp.int32)                                 # [TN, 1]
    ids = jax.lax.broadcasted_iota(jnp.int32, (tn, n_ops), 1)
    op_score = jnp.sum(jnp.where(ids == ops, lut_ref[...], 0.0),
                       axis=-1, keepdims=True)                        # [TN, 1]

    # shape / attr branches: fused weight vector per branch, stored lane-aligned
    # with the input features, so each branch is a full-lane multiply + reduce.
    w = wpack_ref[...]                                                # [2, F]
    shape_score = (jnp.sum(x * w[0:1, :], axis=-1, keepdims=True)
                   + bpack_ref[0:1, 0:1])                             # [TN, 1]
    attr_score = (jnp.sum(x * w[1:2, :], axis=-1, keepdims=True)
                  + bpack_ref[0:1, 1:2])                              # [TN, 1]

    return jnp.abs(
        jnp.concatenate([op_score, shape_score, attr_score], axis=-1))


def _kernel_lane_major(x_ref, lut_ref, wpack_ref, bpack_ref, o_ref):
    # Lane-dense store: o_ref is [3, TN]. The small [TN,3]->[3,TN] relayout
    # rides the otherwise-idle XLU and replaces masked 3-lane stores (and the
    # 12 B/row writeback DMA rows) with full-lane stores.
    o_ref[...] = _scores(x_ref, lut_ref, wpack_ref, bpack_ref).T


def _kernel_row_major(x_ref, lut_ref, wpack_ref, bpack_ref, o_ref):
    o_ref[...] = _scores(x_ref, lut_ref, wpack_ref, bpack_ref)


# ---------------------------------------------------------------------------
# Tile sizing: largest 128-aligned row tile that fits a per-generation VMEM
# budget, plus a matching vmem_limit_bytes.
# ---------------------------------------------------------------------------
def _pick_tile(n_rows, n_feat, requested):
    lane_f = 128 * _cdiv(n_feat, 128)              # f32 lanes occupied per row in VMEM
    bytes_per_row = 2 * lane_f * 4 + 2 * 8 * 4     # double-buffered input + output tile
    phys = 64 << 20                                # conservative default: v7x VMEM/TC
    try:
        info_fn = getattr(pltpu, "get_tpu_info", None)
        if info_fn is not None:
            phys = int(getattr(info_fn(), "vmem_capacity_bytes", phys))
    except Exception:
        pass
    budget = min(phys // 2, 40 << 20)
    cap = max(128, (budget // bytes_per_row) // 128 * 128)

    tile = max(128, (min(requested, cap) // 128) * 128)
    tile = min(tile, 128 * _cdiv(n_rows, 128))     # never larger than the row count
    if n_rows >= 2048:                             # >= 2 grid steps so both v7x TCs get work
        tile = min(tile, 128 * _cdiv(_cdiv(n_rows, 2), 128))

    usage = tile * bytes_per_row + (1 << 20)       # + constants / bookkeeping slack
    vmem_limit = min(max(int(usage * 1.25) + (2 << 20), 32 << 20), 56 << 20)
    return tile, vmem_limit


def tgeo_node_embedding(geo_x, params, *, tile_n=16384):
    """Fused TGeoNodeEmbedding forward pass on TPU via Pallas. Returns [N, 3]."""
    N, F = geo_x.shape
    S = params["ws"].shape[0]
    A = params["wa"].shape[0]
    n_ops = params["emb"].shape[0]
    assert F == 1 + S + A
    f32 = jnp.float32

    # ---- wrapper-side algebraic fusion of the back-to-back Linears (f32) ----
    op_lut = (params["emb"].astype(f32) @ params["wopm"].astype(f32)
              + params["bopm"].astype(f32)).reshape(1, n_ops)
    w_shape = (params["ws"].astype(f32) @ params["wsm"].astype(f32)).reshape(S)
    w_attr = (params["wa"].astype(f32) @ params["wam"].astype(f32)).reshape(A)
    w_pack = jnp.zeros((2, F), f32)
    w_pack = w_pack.at[0, 1:1 + S].set(w_shape)
    w_pack = w_pack.at[1, 1 + S:1 + S + A].set(w_attr)
    b_shape = (params["bs"].astype(f32) @ params["wsm"].astype(f32)
               + params["bsm"].astype(f32)).reshape(())
    b_attr = (params["ba"].astype(f32) @ params["wam"].astype(f32)
              + params["bam"].astype(f32)).reshape(())
    b_pack = jnp.stack([b_shape, b_attr]).reshape(1, 2)

    tile_n, vmem_limit = _pick_tile(N, F, tile_n)
    grid = (pl.cdiv(N, tile_n),)
    cparams = pltpu.CompilerParams(
        dimension_semantics=("parallel",),
        vmem_limit_bytes=vmem_limit)
    in_specs = [
        pl.BlockSpec((tile_n, F), lambda i: (i, 0)),
        pl.BlockSpec((1, n_ops), lambda i: (0, 0)),
        pl.BlockSpec((2, F), lambda i: (0, 0)),
        pl.BlockSpec((1, 2), lambda i: (0, 0)),
    ]

    # The input goes to the kernel unpadded and in its original dtype — no
    # wrapper-side jnp.pad / astype (each would cost a full extra HBM pass).
    # Partial last blocks are masked by Pallas; junk rows in the masked region
    # only affect output columns that are never written back.
    try:
        out_t = pl.pallas_call(
            _kernel_lane_major,
            grid=grid,
            in_specs=in_specs,
            out_specs=pl.BlockSpec((3, tile_n), lambda i: (0, i)),
            out_shape=jax.ShapeDtypeStruct((3, N), f32),
            compiler_params=cparams,
        )(geo_x, op_lut, w_pack, b_pack)
        return out_t.T                                    # module API: [N, 3]
    except Exception:
        # Defensive fallback (eager-mode): if this toolchain cannot lower the
        # in-kernel [TN,3]->[3,TN] relayout, store [N,3] directly (masked vst).
        return pl.pallas_call(
            _kernel_row_major,
            grid=grid,
            in_specs=in_specs,
            out_specs=pl.BlockSpec((tile_n, 3), lambda i: (i, 0)),
            out_shape=jax.ShapeDtypeStruct((N, 3), f32),
            compiler_params=cparams,
        )(geo_x, op_lut, w_pack, b_pack)


# ---------------------------------------------------------------------------
# Pure-JAX reference (mirrors the unfused PyTorch forward).
# ---------------------------------------------------------------------------
def reference_forward(geo_x, params):
    S = params["ws"].shape[0]
    A = params["wa"].shape[0]
    ops = geo_x[:, 0].astype(jnp.int32)
    shapes = geo_x[:, 1:1 + S]
    attrs = geo_x[:, 1 + S:1 + S + A]
    op_score = params["emb"][ops] @ params["wopm"] + params["bopm"]
    shape_score = (shapes @ params["ws"] + params["bs"]) @ params["wsm"] + params["bsm"]
    attr_score = (attrs @ params["wa"] + params["ba"]) @ params["wam"] + params["bam"]
    return jnp.abs(jnp.concatenate([op_score, shape_score, attr_score], axis=-1))


if __name__ == "__main__":
    # --- small, module-consistent sizes ------------------------------------
    n_ops = 12             # embedding vocabulary
    S = 8                  # input_shape_size
    A = 6                  # input_attr_size
    E_OP, E_S, E_A = 16, 32, 24   # op/shape/attr embed sizes

    key = jax.random.PRNGKey(0)
    keys = jax.random.split(key, 16)

    # deterministic synthetic parameters (PyTorch Linear weights stored transposed)
    params = {
        "emb":  jax.random.normal(keys[0], (n_ops, E_OP), jnp.float32) * 0.1,
        "ws":   jax.random.normal(keys[1], (S, E_S), jnp.float32) * 0.1,
        "bs":   jax.random.normal(keys[2], (1, E_S), jnp.float32) * 0.1,
        "wa":   jax.random.normal(keys[3], (A, E_A), jnp.float32) * 0.1,
        "ba":   jax.random.normal(keys[4], (1, E_A), jnp.float32) * 0.1,
        "wopm": jax.random.normal(keys[5], (E_OP, 1), jnp.float32) * 0.1,
        "bopm": jax.random.normal(keys[6], (1, 1), jnp.float32) * 0.1,
        "wsm":  jax.random.normal(keys[7], (E_S, 1), jnp.float32) * 0.1,
        "bsm":  jax.random.normal(keys[8], (1, 1), jnp.float32) * 0.1,
        "wam":  jax.random.normal(keys[9], (E_A, 1), jnp.float32) * 0.1,
        "bam":  jax.random.normal(keys[10], (1, 1), jnp.float32) * 0.1,
    }

    def make_input(k, n):
        k1, k2 = jax.random.split(k)
        op_ids = jax.random.randint(k1, (n, 1), 0, n_ops).astype(jnp.float32)
        feat = jax.random.normal(k2, (n, S + A), jnp.float32)
        return jnp.concatenate([op_ids, feat], axis=-1)          # [n, 1+S+A]

    # Case 1: small N (100 rows) — single partial (masked) block.
    geo_x = make_input(keys[11], 100)
    out = jax.block_until_ready(tgeo_node_embedding(geo_x, params))
    ref = reference_forward(geo_x, params)
    assert out.shape == (100, 3)
    assert jnp.allclose(out, ref, atol=1e-5, rtol=1e-4), "mismatch vs reference (small)"

    # Case 2: multi-block grid with a ragged last block (forced small tile).
    geo_x2 = make_input(keys[12], 4133)
    out2 = jax.block_until_ready(tgeo_node_embedding(geo_x2, params, tile_n=512))
    ref2 = reference_forward(geo_x2, params)
    assert out2.shape == (4133, 3)
    assert jnp.allclose(out2, ref2, atol=1e-5, rtol=1e-4), "mismatch vs reference (large)"

    # TODO(synk): _count_ops updates a stateful nn.Parameter buffer (obs_observed);
    # no Pallas analog, so the op-observation histogram is computed in plain JAX.
    op_counts = jnp.zeros((n_ops,), jnp.float32).at[
        geo_x[:, 0].astype(jnp.int32)].add(1.0)
    _ = jax.block_until_ready(op_counts)

    print("KERNEL_OK")
</pallas_src>

<mosaic_0001>
module attributes {stable_mosaic.version = 11 : i64} {
  func.func @_kernel_lane_major(%arg0: i32, %arg1: memref<128x15xf32, #tpu.memory_space<vmem>>, %arg2: memref<1x12xf32, #tpu.memory_space<vmem>>, %arg3: memref<2x15xf32, #tpu.memory_space<vmem>>, %arg4: memref<1x2xf32, #tpu.memory_space<vmem>>, %arg5: memref<3x128xf32, #tpu.memory_space<vmem>>) attributes {dimension_semantics = [#tpu.dimension_semantics<parallel>], iteration_bounds = array<i64: 1>, scalar_prefetch = 0 : i64, scratch_operands = 0 : i64, tpu.core_type = #tpu.core_type<tc>, window_params = [{transform_indices = @transform_0, window_bounds = array<i64: 128, 15>}, {pipeline_mode = #tpu.pipeline_mode<synchronous>, transform_indices = @transform_1, window_bounds = array<i64: 1, 12>}, {pipeline_mode = #tpu.pipeline_mode<synchronous>, transform_indices = @transform_2, window_bounds = array<i64: 2, 15>}, {pipeline_mode = #tpu.pipeline_mode<synchronous>, transform_indices = @transform_3, window_bounds = array<i64: 1, 2>}, {transform_indices = @transform_4, window_bounds = array<i64: 3, 128>}]} {
    %c0 = arith.constant 0 : index
    %c0_0 = arith.constant 0 : index
    %0 = vector.load %arg1[%c0, %c0_0] : memref<128x15xf32, #tpu.memory_space<vmem>>, vector<128x15xf32>
    %1 = vector.extract_strided_slice %0 {offsets = [0, 0], sizes = [128, 1], strides = [1, 1]} : vector<128x15xf32> to vector<128x1xf32>
    %2 = arith.fptosi %1 : vector<128x1xf32> to vector<128x1xi32>
    %3 = tpu.iota {dimensions = array<i32: 1>} : vector<128x12xi32>
    %4 = vector.broadcast %2 : vector<128x1xi32> to vector<128x12xi32>
    %5 = arith.cmpi eq, %3, %4 : vector<128x12xi32>
    %c0_1 = arith.constant 0 : index
    %c0_2 = arith.constant 0 : index
    %6 = vector.load %arg2[%c0_1, %c0_2] : memref<1x12xf32, #tpu.memory_space<vmem>>, vector<1x12xf32>
    %cst = arith.constant 0.000000e+00 : f32
    %7 = vector.shape_cast %6 : vector<1x12xf32> to vector<1x12xf32>
    %8 = vector.broadcast %7 : vector<1x12xf32> to vector<128x12xf32>
    %9 = vector.broadcast %cst : f32 to vector<128x12xf32>
    %10 = arith.select %5, %8, %9 : vector<128x12xi1>, vector<128x12xf32>
    %cst_3 = arith.constant dense<0.000000e+00> : vector<128xf32>
    %11 = vector.multi_reduction <add>, %10, %cst_3 [1] : vector<128x12xf32> to vector<128xf32>
    %12 = vector.shape_cast %11 : vector<128xf32> to vector<128x1xf32>
    %c0_4 = arith.constant 0 : index
    %c0_5 = arith.constant 0 : index
    %13 = vector.load %arg3[%c0_4, %c0_5] : memref<2x15xf32, #tpu.memory_space<vmem>>, vector<2x15xf32>
    %14 = vector.extract_strided_slice %13 {offsets = [0, 0], sizes = [1, 15], strides = [1, 1]} : vector<2x15xf32> to vector<1x15xf32>
    %15 = vector.broadcast %14 : vector<1x15xf32> to vector<128x15xf32>
    %16 = arith.mulf %0, %15 : vector<128x15xf32>
    %cst_6 = arith.constant dense<0.000000e+00> : vector<128xf32>
    %17 = vector.multi_reduction <add>, %16, %cst_6 [1] : vector<128x15xf32> to vector<128xf32>
    %18 = vector.shape_cast %17 : vector<128xf32> to vector<128x1xf32>
    %c0_7 = arith.constant 0 : index
    %c0_8 = arith.constant 0 : index
    %19 = vector.load %arg4[%c0_7, %c0_8] : memref<1x2xf32, #tpu.memory_space<vmem>>, vector<1x1xf32>
    %20 = vector.broadcast %19 : vector<1x1xf32> to vector<128x1xf32>
    %21 = arith.addf %18, %20 : vector<128x1xf32>
    %22 = vector.extract_strided_slice %13 {offsets = [1, 0], sizes = [1, 15], strides = [1, 1]} : vector<2x15xf32> to vector<1x15xf32>
    %23 = vector.broadcast %22 : vector<1x15xf32> to vector<128x15xf32>
    %24 = arith.mulf %0, %23 : vector<128x15xf32>
    %cst_9 = arith.constant dense<0.000000e+00> : vector<128xf32>
    %25 = vector.multi_reduction <add>, %24, %cst_9 [1] : vector<128x15xf32> to vector<128xf32>
    %26 = vector.shape_cast %25 : vector<128xf32> to vector<128x1xf32>
    %c0_10 = arith.constant 0 : index
    %c1 = arith.constant 1 : index
    %27 = vector.load %arg4[%c0_10, %c1] : memref<1x2xf32, #tpu.memory_space<vmem>>, vector<1x1xf32>
    %28 = vector.broadcast %27 : vector<1x1xf32> to vector<128x1xf32>
    %29 = arith.addf %26, %28 : vector<128x1xf32>
    %30 = tpu.concatenate %12, %21, %29 in 1 : vector<128x1xf32>, vector<128x1xf32>, vector<128x1xf32> -> vector<128x3xf32>
    %31 = math.absf %30 : vector<128x3xf32>
    %32 = tpu.transpose %31, [1, 0] : vector<128x3xf32> -> vector<3x128xf32>
    %c0_11 = arith.constant 0 : index
    %c0_12 = arith.constant 0 : index
    %33 = vector.load %arg5[%c0_11, %c0_12] : memref<3x128xf32, #tpu.memory_space<vmem>>, vector<3x128xf32>
    tpu.vector_store %arg5[%c0_11, %c0_12], %32 {strides = array<i32>} : memref<3x128xf32, #tpu.memory_space<vmem>>, vector<3x128xf32>,
    return
  }
  func.func @transform_0(%arg0: i32) -> (i32, i32) {
    %c0_i32 = arith.constant 0 : i32
    %c0_i32_0 = arith.constant 0 : i32
    return %arg0, %c0_i32 : i32, i32
  }
  func.func @transform_1(%arg0: i32) -> (i32, i32) {
    %c0_i32 = arith.constant 0 : i32
    %c0_i32_0 = arith.constant 0 : i32
    %c0_i32_1 = arith.constant 0 : i32
    return %c0_i32, %c0_i32_0 : i32, i32
  }
  func.func @transform_2(%arg0: i32) -> (i32, i32) {
    %c0_i32 = arith.constant 0 : i32
    %c0_i32_0 = arith.constant 0 : i32
    %c0_i32_1 = arith.constant 0 : i32
    return %c0_i32, %c0_i32_0 : i32, i32
  }
  func.func @transform_3(%arg0: i32) -> (i32, i32) {
    %c0_i32 = arith.constant 0 : i32
    %c0_i32_0 = arith.constant 0 : i32
    %c0_i32_1 = arith.constant 0 : i32
    return %c0_i32, %c0_i32_0 : i32, i32
  }
  func.func @transform_4(%arg0: i32) -> (i32, i32) {
    %c0_i32 = arith.constant 0 : i32
    %c0_i32_0 = arith.constant 0 : i32
    return %c0_i32, %arg0 : i32, i32
  }
}

module attributes {stable_mosaic.version = 11 : i64} {
  func.func @_kernel_row_major(%arg0: i32, %arg1: memref<128x15xf32, #tpu.memory_space<vmem>>, %arg2: memref<1x12xf32, #tpu.memory_space<vmem>>, %arg3: memref<2x15xf32, #tpu.memory_space<vmem>>, %arg4: memref<1x2xf32, #tpu.memory_space<vmem>>, %arg5: memref<128x3xf32, #tpu.memory_space<vmem>>) attributes {dimension_semantics = [#tpu.dimension_semantics<parallel>], iteration_bounds = array<i64: 1>, scalar_prefetch = 0 : i64, scratch_operands = 0 : i64, tpu.core_type = #tpu.core_type<tc>, window_params = [{transform_indices = @transform_0, window_bounds = array<i64: 128, 15>}, {pipeline_mode = #tpu.pipeline_mode<synchronous>, transform_indices = @transform_1, window_bounds = array<i64: 1, 12>}, {pipeline_mode = #tpu.pipeline_mode<synchronous>, transform_indices = @transform_2, window_bounds = array<i64: 2, 15>}, {pipeline_mode = #tpu.pipeline_mode<synchronous>, transform_indices = @transform_3, window_bounds = array<i64: 1, 2>}, {transform_indices = @transform_4, window_bounds = array<i64: 128, 3>}]} {
    %c0 = arith.constant 0 : index
    %c0_0 = arith.constant 0 : index
    %0 = vector.load %arg1[%c0, %c0_0] : memref<128x15xf32, #tpu.memory_space<vmem>>, vector<128x15xf32>
    %1 = vector.extract_strided_slice %0 {offsets = [0, 0], sizes = [128, 1], strides = [1, 1]} : vector<128x15xf32> to vector<128x1xf32>
    %2 = arith.fptosi %1 : vector<128x1xf32> to vector<128x1xi32>
    %3 = tpu.iota {dimensions = array<i32: 1>} : vector<128x12xi32>
    %4 = vector.broadcast %2 : vector<128x1xi32> to vector<128x12xi32>
    %5 = arith.cmpi eq, %3, %4 : vector<128x12xi32>
    %c0_1 = arith.constant 0 : index
    %c0_2 = arith.constant 0 : index
    %6 = vector.load %arg2[%c0_1, %c0_2] : memref<1x12xf32, #tpu.memory_space<vmem>>, vector<1x12xf32>
    %cst = arith.constant 0.000000e+00 : f32
    %7 = vector.shape_cast %6 : vector<1x12xf32> to vector<1x12xf32>
    %8 = vector.broadcast %7 : vector<1x12xf32> to vector<128x12xf32>
    %9 = vector.broadcast %cst : f32 to vector<128x12xf32>
    %10 = arith.select %5, %8, %9 : vector<128x12xi1>, vector<128x12xf32>
    %cst_3 = arith.constant dense<0.000000e+00> : vector<128xf32>
    %11 = vector.multi_reduction <add>, %10, %cst_3 [1] : vector<128x12xf32> to vector<128xf32>
    %12 = vector.shape_cast %11 : vector<128xf32> to vector<128x1xf32>
    %c0_4 = arith.constant 0 : index
    %c0_5 = arith.constant 0 : index
    %13 = vector.load %arg3[%c0_4, %c0_5] : memref<2x15xf32, #tpu.memory_space<vmem>>, vector<2x15xf32>
    %14 = vector.extract_strided_slice %13 {offsets = [0, 0], sizes = [1, 15], strides = [1, 1]} : vector<2x15xf32> to vector<1x15xf32>
    %15 = vector.broadcast %14 : vector<1x15xf32> to vector<128x15xf32>
    %16 = arith.mulf %0, %15 : vector<128x15xf32>
    %cst_6 = arith.constant dense<0.000000e+00> : vector<128xf32>
    %17 = vector.multi_reduction <add>, %16, %cst_6 [1] : vector<128x15xf32> to vector<128xf32>
    %18 = vector.shape_cast %17 : vector<128xf32> to vector<128x1xf32>
    %c0_7 = arith.constant 0 : index
    %c0_8 = arith.constant 0 : index
    %19 = vector.load %arg4[%c0_7, %c0_8] : memref<1x2xf32, #tpu.memory_space<vmem>>, vector<1x1xf32>
    %20 = vector.broadcast %19 : vector<1x1xf32> to vector<128x1xf32>
    %21 = arith.addf %18, %20 : vector<128x1xf32>
    %22 = vector.extract_strided_slice %13 {offsets = [1, 0], sizes = [1, 15], strides = [1, 1]} : vector<2x15xf32> to vector<1x15xf32>
    %23 = vector.broadcast %22 : vector<1x15xf32> to vector<128x15xf32>
    %24 = arith.mulf %0, %23 : vector<128x15xf32>
    %cst_9 = arith.constant dense<0.000000e+00> : vector<128xf32>
    %25 = vector.multi_reduction <add>, %24, %cst_9 [1] : vector<128x15xf32> to vector<128xf32>
    %26 = vector.shape_cast %25 : vector<128xf32> to vector<128x1xf32>
    %c0_10 = arith.constant 0 : index
    %c1 = arith.constant 1 : index
    %27 = vector.load %arg4[%c0_10, %c1] : memref<1x2xf32, #tpu.memory_space<vmem>>, vector<1x1xf32>
    %28 = vector.broadcast %27 : vector<1x1xf32> to vector<128x1xf32>
    %29 = arith.addf %26, %28 : vector<128x1xf32>
    %30 = tpu.concatenate %12, %21, %29 in 1 : vector<128x1xf32>, vector<128x1xf32>, vector<128x1xf32> -> vector<128x3xf32>
    %31 = math.absf %30 : vector<128x3xf32>
    %c0_11 = arith.constant 0 : index
    %c0_12 = arith.constant 0 : index
    %32 = vector.load %arg5[%c0_11, %c0_12] : memref<128x3xf32, #tpu.memory_space<vmem>>, vector<128x3xf32>
    tpu.vector_store %arg5[%c0_11, %c0_12], %31 {strides = array<i32>} : memref<128x3xf32, #tpu.memory_space<vmem>>, vector<128x3xf32>,
    return
  }
  func.func @transform_0(%arg0: i32) -> (i32, i32) {
    %c0_i32 = arith.constant 0 : i32
    %c0_i32_0 = arith.constant 0 : i32
    return %arg0, %c0_i32 : i32, i32
  }
  func.func @transform_1(%arg0: i32) -> (i32, i32) {
    %c0_i32 = arith.constant 0 : i32
    %c0_i32_0 = arith.constant 0 : i32
    %c0_i32_1 = arith.constant 0 : i32
    return %c0_i32, %c0_i32_0 : i32, i32
  }
  func.func @transform_2(%arg0: i32) -> (i32, i32) {
    %c0_i32 = arith.constant 0 : i32
    %c0_i32_0 = arith.constant 0 : i32
    %c0_i32_1 = arith.constant 0 : i32
    return %c0_i32, %c0_i32_0 : i32, i32
  }
  func.func @transform_3(%arg0: i32) -> (i32, i32) {
    %c0_i32 = arith.constant 0 : i32
    %c0_i32_0 = arith.constant 0 : i32
    %c0_i32_1 = arith.constant 0 : i32
    return %c0_i32, %c0_i32_0 : i32, i32
  }
  func.func @transform_4(%arg0: i32) -> (i32, i32) {
    %c0_i32 = arith.constant 0 : i32
    %c0_i32_0 = arith.constant 0 : i32
    return %arg0, %c0_i32 : i32, i32
  }
}

</mosaic_0001>

<bundles_post_ra>
// kernel: tpu_custom_call.1
= control target key start
LH: loop header
LB: loop body
LE: loop exit
PB: predicated region body
PF: predicated region fallthrough
CT: control target
= control target key end

     0   :  { %v653_v3 = vmov 0   ;;  %s1068_s0 = inlined_call_operand.vmem [shape: f32[100,15], index: 0, kind: input, shape index: {}]   ;;  %s1069_s1 = inlined_call_operand.vmem [shape: f32[1,12], index: 1, kind: input, shape index: {}]   ;;  %s1070_s2 = inlined_call_operand.vmem [shape: f32[2,15], index: 2, kind: input, shape index: {}]   ;;  %s1071_s3 = inlined_call_operand.vmem [shape: f32[1,2], index: 3, kind: input, shape index: {}]   ;;  %s1072_s4 = inlined_call_operand.hbm [shape: f32[3,100], index: 4, kind: output, shape index: {}]  }
   0x1   :  { %v684_v0 = vld [vmem:[%s1068_s0 + $0x10] sm:$0xff]  ;;  %v689_v1 = vld [vmem:[%s1068_s0] sm:$0xff]  ;;  %v694_v2 = vld [vmem:[%s1068_s0 + $0x18] sm:$0xff]  ;;  %628 = vset.pattern.permute.xlu1 %v653_v3  ;;  %627 = vset.pattern.permute.xlu0 %v653_v3 }
   0x2   :  { %v596_v4 = vtrunc.f32 %v684_v0  ;;  %v592_v5 = vtrunc.f32 %v689_v1  ;;  %v598_v6 = vtrunc.f32 %v694_v2  ;;  %v702_v7 = vld [vmem:[%s1068_s0 + $0x8] sm:$0xff]  ;;  %v713_v10 = vld [vmem:[%s1068_s0 + $0x20] sm:$0xff]  ;;  %v720_v17 = vld [vmem:[%s1068_s0 + $0x38] sm:$0xff] }
   0x3   :  { %v594_v8 = vtrunc.f32 %v702_v7  ;;  %v708_v9 = vld [vmem:[%s1068_s0 + $0x28] sm:$0xff]  ;;  %v600_v16 = vtrunc.f32 %v713_v10  ;;  %v725_v18 = vld [vmem:[%s1068_s0 + $0x30] sm:$0xff] }
   0x4   :  { %v597_v11 = vcvt.f32.s32 %v596_v4  ;;  %v593_v12 = vcvt.f32.s32 %v592_v5  ;;  %v599_v13 = vcvt.f32.s32 %v598_v6  ;;  %v602_v15 = vtrunc.f32 %v708_v9 }
   0x5   :  { %v595_v14 = vcvt.f32.s32 %v594_v8 }
   0x6   :  { %59 = vperm.xlu1 %628, %v597_v11   ;;  %53 = vperm.xlu0 %627, %v593_v12  }
   0x7   :  { %9 = vsyncpa [#allocation3], 0  ;;  %v603_v19 = vcvt.f32.s32 %v602_v15  ;;  %v601_v20 = vcvt.f32.s32 %v600_v16  ;;  %v606_v21 = vtrunc.f32 %v720_v17  ;;  %v604_v22 = vtrunc.f32 %v725_v18  ;;  %v732_v23 = vld [vmem:[%s1068_s0 + $0x48] sm:$0xff]  ;;  %v737_v24 = vld [vmem:[%s1068_s0 + $0x40] sm:$0xff]  ;;  %s654_s24 = smov 1  }
   0x8   :  { %v50_v25 = vlaneseq  ;;  %v610_v28 = vtrunc.f32 %v732_v23  ;;  %v608_v29 = vtrunc.f32 %v737_v24  ;;  %v744_v30 = vld [vmem:[%s1068_s0 + $0x58] sm:$0xff]  ;;  %v749_v31 = vld [vmem:[%s1068_s0 + $0x50] sm:$0xff]  ;;  %v757_v37 = vld [vmem:[%s1068_s0 + $0x68] sm:$0xff]  ;;  %vm209_vm0 = vcmask 121856  }
   0x9   :  { %v607_v26 = vcvt.f32.s32 %v606_v21  ;;  %v605_v27 = vcvt.f32.s32 %v604_v22  ;;  %v614_v35 = vtrunc.f32 %v744_v30  ;;  %v612_v36 = vtrunc.f32 %v749_v31  ;;  %v762_v38 = vld [vmem:[%s1068_s0 + $0x60] sm:$0xff]  ;;  %v769_v43 = vld [vmem:[%s1068_s0 + $0x78] sm:$0xff]  ;;  %v774_v45 = vld [vmem:[%s1068_s0 + $0x70] sm:$0xff] }
   0xa   :  { %62 = vperm.xlu1 %628, %v599_v13   ;;  %56 = vperm.xlu0 %627, %v595_v14   ;;  %v190_v32 = vshrl.u32 %v50_v25, 7  ;;  %v611_v33 = vcvt.f32.s32 %v610_v28  ;;  %v609_v34 = vcvt.f32.s32 %v608_v29  ;;  %v618_v39 = vtrunc.f32 %v757_v37  ;;  %v188_v46 = vld [vmem:[%s1070_s2] sm:$0x3] }
   0xb   :  { %v615_v40 = vcvt.f32.s32 %v614_v35  ;;  %v613_v41 = vcvt.f32.s32 %v612_v36  ;;  %v616_v42 = vtrunc.f32 %v762_v38  ;;  %v622_v47 = vtrunc.f32 %v769_v43 }
   0xc   :  { %v191_v44 = vsub.s32 0, %v190_v32  ;;  %v619_v48 = vcvt.f32.s32 %v618_v39  ;;  %v620_v50 = vtrunc.f32 %v774_v45  ;;  %v283_v56 = vsub.s32 1, %v190_v32 }
   0xd   :  { %v617_v49 = vcvt.f32.s32 %v616_v42  ;;  %v623_v53 = vcvt.f32.s32 %v622_v47  ;;  %vm139_vm1 = vcmask 97280  }
   0xe   :  { %68 = vperm.xlu1 %628, %v603_v19   ;;  %65 = vperm.xlu0 %627, %v601_v20   ;;  %v781_v51 = vrot.slane %v188_v46, %v191_v44  ;;  %v621_v54 = vcvt.f32.s32 %v620_v50  ;;  %v788_v57 = vrot.slane %v188_v46, %v283_v56 }
  0x10   :  { %v208_v52 = vmul.f32 %v781_v51, %v769_v43  ;;  %v285_v58 = vmul.f32 %v788_v57, %v689_v1  ;;  %v286_v60 = vmul.f32 %v788_v57, %v702_v7  ;;  %v193_v61 = vmul.f32 %v781_v51, %v689_v1 }
  0x11   :  { %v287_v63 = vmul.f32 %v788_v57, %v684_v0  ;;  %v194_v4 = vmul.f32 %v781_v51, %v702_v7  ;;  %v288_v6 = vmul.f32 %v788_v57, %v694_v2  ;;  %v195_v8 = vmul.f32 %v781_v51, %v684_v0 }
  0x12   :  { %74 = vperm.xlu1 %628, %v607_v26   ;;  %71 = vperm.xlu0 %627, %v605_v27   ;;  %v786_v55 = vsel %vm209_vm0, %v208_v52, 0.0  ;;  %v301_v59 = vsel %vm209_vm0, %v285_v58, 0.0  ;;  %v304_v62 = vsel %vm209_vm0, %v286_v60, 0.0  ;;  %v210_v3 = vsel %vm209_vm0, %v193_v61, 0.0 }
  0x13   :  { %v307_v5 = vsel %vm209_vm0, %v287_v63, 0.0  ;;  %v213_v1 = vsel %vm209_vm0, %v194_v4, 0.0  ;;  %v310_v11 = vsel %vm209_vm0, %v288_v6, 0.0  ;;  %v289_v12 = vmul.f32 %v788_v57, %v713_v10 }
  0x14   :  { %v216_v7 = vsel %vm209_vm0, %v195_v8, 0.0  ;;  %v196_v13 = vmul.f32 %v781_v51, %v694_v2  ;;  %v290_v15 = vmul.f32 %v788_v57, %v708_v9  ;;  %v197_v16 = vmul.f32 %v781_v51, %v713_v10 }
  0x15   :  { %v313_v14 = vsel %vm209_vm0, %v289_v12, 0.0  ;;  %v291_v20 = vmul.f32 %v788_v57, %v725_v18  ;;  %v198_v21 = vmul.f32 %v781_v51, %v708_v9  ;;  %v292_v26 = vmul.f32 %v788_v57, %v720_v17 }
  0x16   :  { %80 = vperm.xlu1 %628, %v611_v33   ;;  %77 = vperm.xlu0 %627, %v609_v34   ;;  %v219_v0 = vsel %vm209_vm0, %v196_v13, 0.0  ;;  %v316_v19 = vsel %vm209_vm0, %v290_v15, 0.0  ;;  %v222_v2 = vsel %vm209_vm0, %v197_v16, 0.0  ;;  %v199_v27 = vmul.f32 %v781_v51, %v725_v18 }
  0x17   :  { %v319_v22 = vsel %vm209_vm0, %v291_v20, 0.0  ;;  %v225_v10 = vsel %vm209_vm0, %v198_v21, 0.0  ;;  %v322_v28 = vsel %vm209_vm0, %v292_v26, 0.0  ;;  %v293_v29 = vmul.f32 %v788_v57, %v737_v24 }
  0x18   :  { %v228_v9 = vsel %vm209_vm0, %v199_v27, 0.0  ;;  %v200_v32 = vmul.f32 %v781_v51, %v720_v17  ;;  %v294_v34 = vmul.f32 %v788_v57, %v732_v23  ;;  %v201_v35 = vmul.f32 %v781_v51, %v737_v24 }
  0x19   :  { %v325_v33 = vsel %vm209_vm0, %v293_v29, 0.0  ;;  %v295_v39 = vmul.f32 %v788_v57, %v749_v31  ;;  %v296_v42 = vmul.f32 %v788_v57, %v744_v30  ;;  %v203_v44 = vmul.f32 %v781_v51, %v749_v31 }
  0x1a   :  { %86 = vperm.xlu1 %628, %v615_v40   ;;  %83 = vperm.xlu0 %627, %v613_v41   ;;  %v231_v18 = vsel %vm209_vm0, %v200_v32, 0.0  ;;  %v328_v36 = vsel %vm209_vm0, %v294_v34, 0.0  ;;  %v234_v17 = vsel %vm209_vm0, %v201_v35, 0.0  ;;  %v202_v40 = vmul.f32 %v781_v51, %v732_v23 }
  0x1b   :  { %v331_v41 = vsel %vm209_vm0, %v295_v39, 0.0  ;;  %v334_v46 = vsel %vm209_vm0, %v296_v42, 0.0  ;;  %v297_v47 = vmul.f32 %v788_v57, %v762_v38  ;;  %v240_v23 = vsel %vm209_vm0, %v203_v44, 0.0 }
  0x1c   :  { %v237_v24 = vsel %vm209_vm0, %v202_v40, 0.0  ;;  %v298_v50 = vmul.f32 %v788_v57, %v757_v37  ;;  %v205_v52 = vmul.f32 %v781_v51, %v762_v38  ;;  %v206_v56 = vmul.f32 %v781_v51, %v757_v37 }
  0x1d   :  { %v207_v60 = vmul.f32 %v781_v51, %v774_v45  ;;  %v884_v37 = vand.u32 127, %v50_v25 }
  0x1e   :  { %92 = vperm.xlu1 %628, %v619_v48   ;;  %89 = vperm.xlu0 %627, %v617_v49   ;;  %v204_v48 = vmul.f32 %v781_v51, %v744_v30  ;;  %v337_v49 = vsel %vm209_vm0, %v297_v47, 0.0  ;;  %v246_v30 = vsel %vm209_vm0, %v205_v52, 0.0  ;;  %v249_v38 = vsel %vm209_vm0, %v206_v56, 0.0 }
  0x20   :  { %v243_v31 = vsel %vm209_vm0, %v204_v48, 0.0 }
  0x22   :  { %98 = vperm.xlu1 %628, %v623_v53   ;;  %95 = vperm.xlu0 %627, %v621_v54   ;;  %v340_v53 = vsel %vm209_vm0, %v298_v50, 0.0  ;;  %v299_v54 = vmul.f32 %v788_v57, %v774_v45 }
  0x24   :  { %v343_v58 = vsel %vm209_vm0, %v299_v54, 0.0 }
  0x41   :  { %302 = vadd.xlane.f32.xlu0 %v301_v59  ;;  %v300_v59 = vmul.f32 %v788_v57, %v769_v43  ;;  %v890_v43 = vld [vmem:[%s1069_s1] ss:$0 sm:$0xff] }
  0x43   :  { %v346_v61 = vsel %vm209_vm0, %v300_v59, 0.0 }
  0x45   :  { %305 = vadd.xlane.f32.xlu0 %v304_v62  ;;  %v252_v62 = vsel %vm209_vm0, %v207_v60, 0.0 }
  0x46   :  { %211 = vadd.xlane.f32.xlu1 %v210_v3 }
  0x49   :  { %308 = vadd.xlane.f32.xlu0 %v307_v5 }
  0x4a   :  { %214 = vadd.xlane.f32.xlu1 %v213_v1 }
  0x4d   :  { %311 = vadd.xlane.f32.xlu0 %v310_v11 }
  0x4e   :  { %217 = vadd.xlane.f32.xlu1 %v216_v7 }
  0x51   :  { %314 = vadd.xlane.f32.xlu0 %v313_v14 }
  0x52   :  { %220 = vadd.xlane.f32.xlu1 %v219_v0 }
  0x55   :  { %317 = vadd.xlane.f32.xlu0 %v316_v19 }
  0x56   :  { %223 = vadd.xlane.f32.xlu1 %v222_v2 }
  0x59   :  { %320 = vadd.xlane.f32.xlu0 %v319_v22 }
  0x5a   :  { %226 = vadd.xlane.f32.xlu1 %v225_v10 }
  0x5d   :  { %323 = vadd.xlane.f32.xlu0 %v322_v28 }
  0x5e   :  { %229 = vadd.xlane.f32.xlu1 %v228_v9 }
  0x61   :  { %326 = vadd.xlane.f32.xlu0 %v325_v33 }
  0x62   :  { %232 = vadd.xlane.f32.xlu1 %v231_v18 }
  0x65   :  { %329 = vadd.xlane.f32.xlu0 %v328_v36 }
  0x66   :  { %235 = vadd.xlane.f32.xlu1 %v234_v17 }
  0x69   :  { %332 = vadd.xlane.f32.xlu0 %v331_v41 }
  0x6a   :  { %238 = vadd.xlane.f32.xlu1 %v237_v24 }
  0x6d   :  { %335 = vadd.xlane.f32.xlu0 %v334_v46 }
  0x6e   :  { %241 = vadd.xlane.f32.xlu1 %v240_v23 }
  0x71   :  { %338 = vadd.xlane.f32.xlu0 %v337_v49  ;;  %v945_v49 = vld [vmem:[%s1071_s3] ss:$0 sm:$0xff]  ;;  %s655_s3 = smov [#allocation2]  }
  0x72   :  { %244 = vadd.xlane.f32.xlu1 %v243_v31  ;;  %s582_s25 = sshll.u32 %s655_s3, 4  ;;  %s583_s25 = int_to_ptr.vmem [resolvable:$true] %s582_s25 }
  0x73   :  { %s629_s26 = scalar_lea.vmem %s583_s25, 64  ;;  %p634_p1 = scmp.lt.s32.totalorder %s583_s25, %s583_s25 }
  0x74   :  { %p630_p0 = scmp.ne.s32.totalorder %s583_s25, %s629_s26  ;;  %p635_p2 = scmp.lt.s32.totalorder %s629_s26, %s629_s26 }
  0x75   :  { %341 = vadd.xlane.f32.xlu0 %v340_v53 }
  0x76   :  { %247 = vadd.xlane.f32.xlu1 %v246_v30  ;;  %p636_p3 = por %p635_p2, %p634_p1 }
  0x78   :  { %p637_p4 = pnand %p636_p3, %p630_p0 }
  0x79   :  { %344 = vadd.xlane.f32.xlu0 %v343_v58 }
  0x7a   :  { %250 = vadd.xlane.f32.xlu1 %v249_v38 }
  0x7d   :  { %347 = vadd.xlane.f32.xlu0 %v346_v61 }
  0x7e   :  { %253 = vadd.xlane.f32.xlu1 %v252_v62 }
  0x82   :  { %256 = vadd.xlane.f32.xlu1 %v786_v55 }
  0x85   :  { %v60_v57 = vpop.permute.xlu1 %59  ;;  %v54_v45 = vpop.permute.xlu0 %53 }
  0x86   :  { %vm102_vm2 = vcmp.eq.s32.totalorder %v884_v37, %v60_v57  ;;  %vm100_vm3 = vcmp.eq.s32.totalorder %v884_v37, %v54_v45 }
  0x87   :  { %v123_v51 = vsel %vm100_vm3, %v890_v43, 0.0  ;;  %v125_v55 = vsel %vm102_vm2, %v890_v43, 0.0  ;;  %vm510_vm3 = vcmask 15360  }
  0x88   :  { %v140_v63 = vsel %vm139_vm1, %v123_v51, 0.0  ;;  %v146_v5 = vsel %vm139_vm1, %v125_v55, 0.0 }
  0x89   :  { %v63_v25 = vpop.permute.xlu1 %62  ;;  %141 = vadd.xlane.f32.xlu0 %v140_v63  ;;  %v57_v3 = vpop.permute.xlu0 %56 }
  0x8a   :  { %vm103_vm4 = vcmp.eq.s32.totalorder %v884_v37, %v63_v25  ;;  %vm101_vm5 = vcmp.eq.s32.totalorder %v884_v37, %v57_v3 }
  0x8b   :  { %v124_v4 = vsel %vm101_vm5, %v890_v43, 0.0  ;;  %v126_v11 = vsel %vm103_vm4, %v890_v43, 0.0 }
  0x8c   :  { %v143_v6 = vsel %vm139_vm1, %v124_v4, 0.0  ;;  %v149_v7 = vsel %vm139_vm1, %v126_v11, 0.0 }
  0x8d   :  { %v69_v1 = vpop.permute.xlu1 %68  ;;  %147 = vadd.xlane.f32.xlu0 %v146_v5  ;;  %144 = vadd.xlane.f32.xlu1 %v143_v6  ;;  %v66_v8 = vpop.permute.xlu0 %65 }
  0x8e   :  { %vm105_vm6 = vcmp.eq.s32.totalorder %v884_v37, %v69_v1  ;;  %vm104_vm7 = vcmp.eq.s32.totalorder %v884_v37, %v66_v8 }
  0x8f   :  { %v127_v12 = vsel %vm104_vm7, %v890_v43, 0.0  ;;  %v128_v0 = vsel %vm105_vm6, %v890_v43, 0.0 }
  0x90   :  { %v152_v13 = vsel %vm139_vm1, %v127_v12, 0.0  ;;  %v155_v19 = vsel %vm139_vm1, %v128_v0, 0.0 }
  0x91   :  { %v75_v14 = vpop.permute.xlu1 %74  ;;  %150 = vadd.xlane.f32.xlu0 %v149_v7  ;;  %153 = vadd.xlane.f32.xlu1 %v152_v13  ;;  %v72_v15 = vpop.permute.xlu0 %71 }
  0x92   :  { %vm107_vm8 = vcmp.eq.s32.totalorder %v884_v37, %v75_v14  ;;  %vm106_vm9 = vcmp.eq.s32.totalorder %v884_v37, %v72_v15 }
  0x93   :  { %v129_v16 = vsel %vm106_vm9, %v890_v43, 0.0  ;;  %v130_v22 = vsel %vm107_vm8, %v890_v43, 0.0 }
  0x94   :  { %v158_v20 = vsel %vm139_vm1, %v129_v16, 0.0  ;;  %v161_v10 = vsel %vm139_vm1, %v130_v22, 0.0 }
  0x95   :  { %v81_v2 = vpop.permute.xlu1 %80  ;;  %156 = vadd.xlane.f32.xlu0 %v155_v19  ;;  %159 = vadd.xlane.f32.xlu1 %v158_v20  ;;  %v78_v21 = vpop.permute.xlu0 %77 }
  0x96   :  { %vm109_vm10 = vcmp.eq.s32.totalorder %v884_v37, %v81_v2  ;;  %vm108_vm11 = vcmp.eq.s32.totalorder %v884_v37, %v78_v21 }
  0x97   :  { %v131_v26 = vsel %vm108_vm11, %v890_v43, 0.0  ;;  %v132_v9 = vsel %vm109_vm10, %v890_v43, 0.0 }
  0x98   :  { %v164_v27 = vsel %vm139_vm1, %v131_v26, 0.0  ;;  %v167_v34 = vsel %vm139_vm1, %v132_v9, 0.0 }
  0x99   :  { %v87_v28 = vpop.permute.xlu1 %86  ;;  %162 = vadd.xlane.f32.xlu0 %v161_v10  ;;  %165 = vadd.xlane.f32.xlu1 %v164_v27  ;;  %v84_v29 = vpop.permute.xlu0 %83 }
  0x9a   :  { %vm111_vm12 = vcmp.eq.s32.totalorder %v884_v37, %v87_v28  ;;  %vm110_vm13 = vcmp.eq.s32.totalorder %v884_v37, %v84_v29 }
  0x9b   :  { %v133_v32 = vsel %vm110_vm13, %v890_v43, 0.0  ;;  %v134_v33 = vsel %vm111_vm12, %v890_v43, 0.0 }
  0x9c   :  { %v170_v18 = vsel %vm139_vm1, %v133_v32, 0.0  ;;  %v173_v35 = vsel %vm139_vm1, %v134_v33, 0.0 }
  0x9d   :  { %v93_v36 = vpop.permute.xlu1 %92  ;;  %168 = vadd.xlane.f32.xlu0 %v167_v34  ;;  %171 = vadd.xlane.f32.xlu1 %v170_v18  ;;  %v90_v39 = vpop.permute.xlu0 %89 }
  0x9e   :  { %vm113_vm14 = vcmp.eq.s32.totalorder %v884_v37, %v93_v36  ;;  %vm112_vm15 = vcmp.eq.s32.totalorder %v884_v37, %v90_v39 }
  0x9f   :  { %v135_v17 = vsel %vm112_vm15, %v890_v43, 0.0  ;;  %v136_v40 = vsel %vm113_vm14, %v890_v43, 0.0 }
  0xa0   :  { %v176_v41 = vsel %vm139_vm1, %v135_v17, 0.0  ;;  %v179_v42 = vsel %vm139_vm1, %v136_v40, 0.0 }
  0xa1   :  { %v99_v24 = vpop.permute.xlu1 %98  ;;  %v96_v44 = vpop.permute.xlu0 %95 }
  0xa2   :  { %vm115_vm0 = vcmp.eq.s32.totalorder %v884_v37, %v99_v24  ;;  %vm114_vm2 = vcmp.eq.s32.totalorder %v884_v37, %v96_v44 }
  0xa3   :  { %v137_v46 = vsel %vm114_vm2, %v890_v43, 0.0  ;;  %v138_v47 = vsel %vm115_vm0, %v890_v43, 0.0 }
  0xa4   :  { %v182_v23 = vsel %vm139_vm1, %v137_v46, 0.0  ;;  %v940_v48 = vsel %vm139_vm1, %v138_v47, 0.0  ;;  %vm493_vm1 = vcmask 7168  }
  0xce   :  { %v303_v50 = vpop.xlane.xlu0 %302 }
  0xcf   :  { %v349_v31 = vadd.f32 %v945_v49, %v303_v50 }
  0xd1   :  { %445 = vrot.lane.b32.xlu1 %v349_v31, %s654_s24 }
  0xd2   :  { %v306_v52 = vpop.xlane.xlu0 %305 }
  0xd3   :  { %v212_v53 = vpop.xlane.xlu1 %211  ;;  %v350_v30 = vadd.f32 %v945_v49, %v306_v52 }
  0xd4   :  { %v265_v54 = vadd.f32 %v945_v49, %v212_v53 }
  0xd6   :  { %381 = vrot.lane.b32.xlu0 %v265_v54, %s654_s24  ;;  %v309_v56 = vpop.xlane.xlu0 %308 }
  0xd7   :  { %v215_v58 = vpop.xlane.xlu1 %214  ;;  %v351_v38 = vadd.f32 %v945_v49, %v309_v56 }
  0xd8   :  { %v266_v59 = vadd.f32 %v945_v49, %v215_v58 }
  0xda   :  { %383 = vrot.lane.b32.xlu1 %v266_v59, %s654_s24  ;;  %447 = vrot.lane.b32.xlu0 %v350_v30, %s654_s24  ;;  %v312_v61 = vpop.xlane.xlu0 %311 }
  0xdb   :  { %v218_v60 = vpop.xlane.xlu1 %217  ;;  %v352_v37 = vadd.f32 %v945_v49, %v312_v61 }
  0xdc   :  { %v267_v62 = vadd.f32 %v945_v49, %v218_v60 }
  0xde   :  { %385 = vrot.lane.b32.xlu1 %v267_v62, %s654_s24  ;;  %449 = vrot.lane.b32.xlu0 %v351_v38, %s654_s24  ;;  %v315_v51 = vpop.xlane.xlu0 %314 }
  0xdf   :  { %v221_v43 = vpop.xlane.xlu1 %220  ;;  %v353_v25 = vadd.f32 %v945_v49, %v315_v51 }
  0xe0   :  { %v268_v57 = vadd.f32 %v945_v49, %v221_v43 }
  0xe2   :  { %387 = vrot.lane.b32.xlu1 %v268_v57, %s654_s24  ;;  %451 = vrot.lane.b32.xlu0 %v352_v37, %s654_s24  ;;  %v318_v4 = vpop.xlane.xlu0 %317 }
  0xe3   :  { %v224_v45 = vpop.xlane.xlu1 %223  ;;  %v354_v5 = vadd.f32 %v945_v49, %v318_v4 }
  0xe4   :  { %v269_v63 = vadd.f32 %v945_v49, %v224_v45 }
  0xe6   :  { %389 = vrot.lane.b32.xlu0 %v269_v63, %s654_s24  ;;  %v321_v8 = vpop.xlane.xlu0 %320 }
  0xe7   :  { %v227_v3 = vpop.xlane.xlu1 %226  ;;  %v355_v11 = vadd.f32 %v945_v49, %v321_v8 }
  0xe8   :  { %v270_v55 = vadd.f32 %v945_v49, %v227_v3 }
  0xea   :  { %453 = vrot.lane.b32.xlu0 %v353_v25, %s654_s24  ;;  %v324_v12 = vpop.xlane.xlu0 %323 }
  0xeb   :  { %v230_v6 = vpop.xlane.xlu1 %229  ;;  %v356_v2 = vadd.f32 %v945_v49, %v324_v12 }
  0xec   :  { %v271_v1 = vadd.f32 %v945_v49, %v230_v6 }
  0xee   :  { %v327_v7 = vpop.xlane.xlu0 %326 }
  0xef   :  { %v233_v14 = vpop.xlane.xlu1 %232  ;;  %v357_v10 = vadd.f32 %v945_v49, %v327_v7 }
  0xf0   :  { %v272_v15 = vadd.f32 %v945_v49, %v233_v14 }
  0xf2   :  { %v330_v13 = vpop.xlane.xlu0 %329 }
  0xf3   :  { %v236_v20 = vpop.xlane.xlu1 %235  ;;  %v358_v9 = vadd.f32 %v945_v49, %v330_v13 }
  0xf4   :  { %v273_v21 = vadd.f32 %v945_v49, %v236_v20 }
  0xf6   :  { %v333_v0 = vpop.xlane.xlu0 %332 }
  0xf7   :  { %v239_v26 = vpop.xlane.xlu1 %238  ;;  %v359_v46 = vadd.f32 %v945_v49, %v333_v0 }
  0xf8   :  { %v274_v29 = vadd.f32 %v945_v49, %v239_v26 }
  0xfa   :  { %v336_v16 = vpop.xlane.xlu0 %335 }
  0xfb   :  { %v242_v28 = vpop.xlane.xlu1 %241  ;;  %v360_v39 = vadd.f32 %v945_v49, %v336_v16 }
  0xfc   :  { %v275_v34 = vadd.f32 %v945_v49, %v242_v28 }
  0xfe   :  { %v339_v19 = vpop.xlane.xlu0 %338 }
  0xff   :  { %v245_v33 = vpop.xlane.xlu1 %244  ;;  %v361_v44 = vadd.f32 %v945_v49, %v339_v19 }
 0x100   :  { %v276_v36 = vadd.f32 %v945_v49, %v245_v33 }
 0x102   :  { %v342_v22 = vpop.xlane.xlu0 %341 }
 0x103   :  { %v362_v47 = vadd.f32 %v945_v49, %v342_v22 }
 0x106   :  { %174 = vadd.xlane.f32.xlu1 %v173_v35  ;;  %v345_v27 = vpop.xlane.xlu0 %344  ;;  %v248_v35 = vpop.xlane.xlu1 %247 }
 0x107   :  { %v363_v31 = vadd.f32 %v945_v49, %v345_v27 }
 0x109   :  { %177 = vadd.xlane.f32.xlu0 %v176_v41  ;;  %v277_v41 = vadd.f32 %v945_v49, %v248_v35 }
 0x10a   :  { %v348_v32 = vpop.xlane.xlu0 %347  ;;  %v251_v40 = vpop.xlane.xlu1 %250 }
 0x10b   :  { %v364_v30 = vadd.f32 %v945_v49, %v348_v32 }
 0x10e   :  { %v254_v24 = vpop.xlane.xlu1 %253 }
 0x10f   :  { %v279_v52 = vadd.f32 %v945_v49, %v254_v24 }
 0x112   :  { %v257_v50 = vpop.xlane.xlu1 %256 }
 0x113   :  { %v280_v56 = vadd.f32 %v945_v49, %v257_v50 }
 0x116   :  { %v142_v18 = vpop.xlane.xlu0 %141 }
 0x117   :  { %391 = vrot.lane.b32.xlu1 %v270_v55, %s654_s24 }
 0x11a   :  { %v148_v17 = vpop.xlane.xlu0 %147  ;;  %v145_v54 = vpop.xlane.xlu1 %144 }
 0x11e   :  { %v154_v59 = vpop.xlane.xlu1 %153 }
 0x11f   :  { %455 = vrot.lane.b32.xlu0 %v354_v5, %s654_s24 }
 0x122   :  { %v160_v60 = vpop.xlane.xlu1 %159 }
 0x123   :  { %393 = vrot.lane.b32.xlu0 %v271_v1, %s654_s24 }
 0x126   :  { %v166_v62 = vpop.xlane.xlu1 %165 }
 0x127   :  { %457 = vrot.lane.b32.xlu0 %v355_v11, %s654_s24 }
 0x12a   :  { %v1016_v43 = vpop.xlane.xlu1 %171 }
 0x13b   :  { %180 = vadd.xlane.f32.xlu1 %v179_v42  ;;  %v151_v42 = vpop.xlane.xlu0 %150 }
 0x143   :  { %v446_v45 = vpop.permute.xlu1 %445 }
 0x146   :  { %183 = vadd.xlane.f32.xlu0 %v182_v23  ;;  %v157_v23 = vpop.xlane.xlu0 %156 }
 0x14a   :  { %v1006_v53 = vpop.xlane.xlu0 %162 }
 0x14c   :  { %395 = vrot.lane.b32.xlu1 %v272_v15, %s654_s24  ;;  %v384_v63 = vpop.permute.xlu1 %383 }
 0x14d   :  { %v495_v4 = vsel %vm493_vm1, %v145_v54, %v384_v63 }
 0x14e   :  { %v1014_v58 = vpop.xlane.xlu0 %168 }
 0x150   :  { %v386_v55 = vpop.permute.xlu1 %385 }
 0x151   :  { %v496_v8 = vsel %vm493_vm1, %v148_v17, %v386_v55 }
 0x152   :  { %v382_v38 = vpop.permute.xlu0 %381 }
 0x154   :  { %v388_v11 = vpop.permute.xlu1 %387 }
 0x155   :  { %v497_v13 = vsel %vm493_vm1, %v151_v42, %v388_v11 }
 0x156   :  { %v448_v61 = vpop.permute.xlu0 %447 }
 0x157   :  { %v512_v1 = vsel %vm510_vm3, %v495_v4, %v448_v61 }
 0x158   :  { %v528_v12 = vand.u32 2147483647, %v512_v1 }
 0x15a   :  { %v450_v37 = vpop.permute.xlu0 %449 }
 0x15b   :  { %v513_v7 = vsel %vm510_vm3, %v496_v8, %v450_v37 }
 0x15c   :  { %459 = vrot.lane.b32.xlu0 %v356_v2, %s654_s24  ;;  %v529_v0 = vand.u32 2147483647, %v513_v7 }
 0x15e   :  { %v452_v57 = vpop.permute.xlu0 %451 }
 0x15f   :  { %v514_v16 = vsel %vm510_vm3, %v497_v13, %v452_v57 }
 0x160   :  { %397 = vrot.lane.b32.xlu0 %v273_v21, %s654_s24  ;;  %v530_v19 = vand.u32 2147483647, %v514_v16 }
 0x162   :  { %v390_v51 = vpop.permute.xlu0 %389 }
 0x163   :  { %v498_v20 = vsel %vm493_vm1, %v154_v59, %v390_v51 }
 0x164   :  { %461 = vrot.lane.b32.xlu0 %v357_v10, %s654_s24 }
 0x166   :  { %v454_v25 = vpop.permute.xlu0 %453 }
 0x167   :  { %v515_v21 = vsel %vm510_vm3, %v498_v20, %v454_v25 }
 0x168   :  { %399 = vrot.lane.b32.xlu0 %v274_v29, %s654_s24  ;;  %v531_v26 = vand.u32 2147483647, %v515_v21 }
 0x16c   :  { %463 = vrot.lane.b32.xlu0 %v358_v9, %s654_s24 }
 0x170   :  { %186 = vadd.xlane.f32.xlu1 %v940_v48  ;;  %401 = vrot.lane.b32.xlu0 %v275_v34, %s654_s24  ;;  %v278_v48 = vadd.f32 %v945_v49, %v251_v40  ;;  %v494_v49 = vsel %vm493_vm1, %v142_v18, %v382_v38 }
 0x171   :  { %v511_v3 = vsel %vm510_vm3, %v494_v49, %v446_v45 }
 0x172   :  { %v527_v6 = vand.u32 2147483647, %v511_v3 }
 0x174   :  { %403 = vrot.lane.b32.xlu0 %v276_v36, %s654_s24 }
 0x178   :  { %467 = vrot.lane.b32.xlu0 %v360_v39, %s654_s24 }
 0x17c   :  { %405 = vrot.lane.b32.xlu0 %v277_v41, %s654_s24 }
 0x180   :  { %469 = vrot.lane.b32.xlu0 %v361_v44, %s654_s24 }
 0x181   :  { %465 = vrot.lane.b32.xlu1 %v359_v46, %s654_s24 }
 0x184   :  { %471 = vrot.lane.b32.xlu0 %v362_v47, %s654_s24 }
 0x185   :  { %407 = vrot.lane.b32.xlu1 %v278_v48, %s654_s24 }
 0x188   :  { %473 = vrot.lane.b32.xlu0 %v363_v31, %s654_s24 }
 0x189   :  { %409 = vrot.lane.b32.xlu1 %v279_v52, %s654_s24 }
 0x18c   :  { %475 = vrot.lane.b32.xlu0 %v364_v30, %s654_s24 }
 0x18d   :  { %411 = vrot.lane.b32.xlu1 %v280_v56, %s654_s24 }
 0x193   :  { %v175_v15 = vpop.xlane.xlu1 %174 }
 0x196   :  { %v1021_v5 = vpop.xlane.xlu0 %177 }
 0x197   :  { %v392_v22 = vpop.permute.xlu1 %391 }
 0x198   :  { %v499_v10 = vsel %vm493_vm1, %v157_v23, %v392_v22 }
 0x19a   :  { %v456_v14 = vpop.permute.xlu0 %455 }
 0x19b   :  { %v516_v27 = vsel %vm510_vm3, %v499_v10, %v456_v14 }
 0x19c   :  { %v532_v29 = vand.u32 2147483647, %v516_v27 }
 0x19e   :  { %v394_v2 = vpop.permute.xlu0 %393 }
 0x19f   :  { %v500_v9 = vsel %vm493_vm1, %v160_v60, %v394_v2 }
 0x1a2   :  { %v458_v28 = vpop.permute.xlu0 %457 }
 0x1a3   :  { %v517_v32 = vsel %vm510_vm3, %v500_v9, %v458_v28 }
 0x1a4   :  { %v533_v33 = vand.u32 2147483647, %v517_v32 }
 0x1b6   :  { %543 = vxpose.xlu1.b32.start [1/16] (narrow) %v527_v6, 8 }
 0x1ba   :  { %544 = vxpose.xlu1.b32.cont [2/16] (narrow) %v528_v12, 8 }
 0x1be   :  { %545 = vxpose.xlu1.b32.cont [3/16] (narrow) %v529_v0, 8 }
 0x1c2   :  { %546 = vxpose.xlu1.b32.cont [4/16] (narrow) %v530_v19, 8 }
 0x1c6   :  { %547 = vxpose.xlu1.b32.cont [5/16] (narrow) %v531_v26, 8 }
 0x1c8   :  { %v181_v34 = vpop.xlane.xlu1 %180 }
 0x1ca   :  { %548 = vxpose.xlu1.b32.cont [6/16] (narrow) %v532_v29, 8 }
 0x1cc   :  { %v396_v35 = vpop.permute.xlu1 %395 }
 0x1cd   :  { %v501_v36 = vsel %vm493_vm1, %v1006_v53, %v396_v35 }
 0x1ce   :  { %549 = vxpose.xlu1.b32.cont [7/16] (narrow) %v533_v33, 8 }
 0x1d3   :  { %v184_v18 = vpop.xlane.xlu0 %183 }
 0x1d7   :  { %v460_v39 = vpop.permute.xlu0 %459 }
 0x1d8   :  { %v518_v17 = vsel %vm510_vm3, %v501_v36, %v460_v39 }
 0x1d9   :  { %v534_v40 = vand.u32 2147483647, %v518_v17 }
 0x1db   :  { %550 = vxpose.xlu1.b32.cont [8/16] (narrow) %v534_v40, 8  ;;  %v398_v41 = vpop.permute.xlu0 %397 }
 0x1dc   :  { %v502_v42 = vsel %vm493_vm1, %v166_v62, %v398_v41 }
 0x1df   :  { %v462_v24 = vpop.permute.xlu0 %461 }
 0x1e0   :  { %v519_v44 = vsel %vm510_vm3, %v502_v42, %v462_v24 }
 0x1e1   :  { %v535_v46 = vand.u32 2147483647, %v519_v44 }
 0x1e3   :  { %551 = vxpose.xlu1.b32.cont [9/16] (narrow) %v535_v46, 8  ;;  %v400_v47 = vpop.permute.xlu0 %399 }
 0x1e4   :  { %v503_v23 = vsel %vm493_vm1, %v1014_v58, %v400_v47 }
 0x1e7   :  { %v464_v48 = vpop.permute.xlu0 %463 }
 0x1e8   :  { %v520_v50 = vsel %vm510_vm3, %v503_v23, %v464_v48 }
 0x1e9   :  { %v536_v31 = vand.u32 2147483647, %v520_v50 }
 0x1eb   :  { %552 = vxpose.xlu1.b32.cont [10/16] (narrow) %v536_v31, 8  ;;  %v402_v52 = vpop.permute.xlu0 %401 }
 0x1ec   :  { %v504_v59 = vsel %vm493_vm1, %v1016_v43, %v402_v52 }
 0x1ef   :  { %v404_v53 = vpop.permute.xlu0 %403 }
 0x1f0   :  { %v505_v62 = vsel %vm493_vm1, %v175_v15, %v404_v53 }
 0x1f3   :  { %v468_v54 = vpop.permute.xlu0 %467 }
 0x1f4   :  { %v522_v37 = vsel %vm510_vm3, %v505_v62, %v468_v54 }
 0x1f5   :  { %v538_v45 = vand.u32 2147483647, %v522_v37 }
 0x1f7   :  { %v406_v30 = vpop.permute.xlu0 %405 }
 0x1f8   :  { %v506_v51 = vsel %vm493_vm1, %v1021_v5, %v406_v30 }
 0x1fb   :  { %v470_v38 = vpop.permute.xlu0 %469 }
 0x1fc   :  { %v523_v49 = vsel %vm510_vm3, %v506_v51, %v470_v38 }
 0x1fd   :  { %v187_v56 = vpop.xlane.xlu1 %186  ;;  %v539_v3 = vand.u32 2147483647, %v523_v49 }
 0x1ff   :  { %v472_v63 = vpop.permute.xlu0 %471 }
 0x201   :  { %v466_v60 = vpop.permute.xlu1 %465 }
 0x202   :  { %v521_v61 = vsel %vm510_vm3, %v504_v59, %v466_v60 }
 0x203   :  { %v537_v58 = vand.u32 2147483647, %v521_v61  ;;  %v474_v4 = vpop.permute.xlu0 %473 }
 0x205   :  { %v408_v57 = vpop.permute.xlu1 %407  ;;  %553 = vxpose.xlu1.b32.cont [11/16] (narrow) %v537_v58, 8 }
 0x206   :  { %v507_v43 = vsel %vm493_vm1, %v181_v34, %v408_v57 }
 0x207   :  { %v524_v55 = vsel %vm510_vm3, %v507_v43, %v472_v63  ;;  %v476_v12 = vpop.permute.xlu0 %475 }
 0x208   :  { %v540_v8 = vand.u32 2147483647, %v524_v55 }
 0x209   :  { %v410_v25 = vpop.permute.xlu1 %409  ;;  %554 = vxpose.xlu1.b32.cont [12/16] (narrow) %v538_v45, 8 }
 0x20a   :  { %v508_v6 = vsel %vm493_vm1, %v184_v18, %v410_v25 }
 0x20b   :  { %v525_v11 = vsel %vm510_vm3, %v508_v6, %v474_v4 }
 0x20c   :  { %v541_v7 = vand.u32 2147483647, %v525_v11 }
 0x20d   :  { %555 = vxpose.xlu1.b32.cont [13/16] (narrow) %v539_v3, 8  ;;  %v412_v1 = vpop.permute.xlu1 %411 }
 0x20e   :  { %v509_v5 = vsel %vm493_vm1, %v187_v56, %v412_v1 }
 0x20f   :  { %v526_v13 = vsel %vm510_vm3, %v509_v5, %v476_v12 }
 0x210   :  { %v542_v14 = vand.u32 2147483647, %v526_v13 }
 0x211   :  { %556 = vxpose.xlu1.b32.cont [14/16] (narrow) %v540_v8, 8 }
 0x215   :  { %557 = vxpose.xlu1.b32.cont [15/16] (narrow) %v541_v7, 8 }
 0x219   :  { %558 = vxpose.xlu1.b32.end [16/16] (narrow) %v542_v14, 8 }
 0x25d   :  { %v559_v15 = vpop.trf.xlu1 }
 0x25e   :  { %575 = vst [vmem:[#allocation2] sm:$0x7] %v559_v15 }
 0x25f   :  { %640 = shalt.err (!%p637_p4)
}
 0x260   :  { %s641_s29 = scalar_lea.hbm %s1072_s4, 64 }
 0x261   :  { %p642_p5 = scmp.ne.s32.totalorder %s1072_s4, %s641_s29  ;;  %p645_p6 = scmp.lt.u32.totalorder %s641_s29, %s1072_s4 }
 0x263   :  { %p647_p7 = pnand %p645_p6, %p642_p5 }
 0x265   :  { %650 = shalt.err (!%p647_p7)
}
 0x266   :  { %585 = dma.vmem_to_hbm [thread:$0]  %s583_s25, 64, %s1072_s4, [#allocation3]  }
 0x267   :  { %651 = dma.done.wait [#allocation3], 64  }
 0x268   :  { %652 = vsyncadd [#allocation3], 4294967232 }
 0x269   :  { %589 = vsyncpa [#allocation3], 1 }

// kernel: tpu_custom_call.1
= control target key start
LH: loop header
LB: loop body
LE: loop exit
PB: predicated region body
PF: predicated region fallthrough
CT: control target
= control target key end

     0   :  { %v685_v3 = vmov 0   ;;  %v49_v37 = vlaneseq  ;;  %vm208_vm0 = vcmask 121856   ;;  %vm138_vm1 = vcmask 97280   ;;  %s686_s24 = smov 1   ;;  %s1136_s0 = inlined_call_operand.vmem [shape: f32[100,15], index: 0, kind: input, shape index: {}]   ;;  %s1137_s1 = inlined_call_operand.vmem [shape: f32[1,12], index: 1, kind: input, shape index: {}]   ;;  %s1138_s2 = inlined_call_operand.vmem [shape: f32[2,15], index: 2, kind: input, shape index: {}]   ;;  %s1139_s3 = inlined_call_operand.vmem [shape: f32[1,2], index: 3, kind: input, shape index: {}]   ;;  %s1140_s4 = inlined_call_operand.vmem [shape: f32[100,3], index: 4, kind: output, shape index: {}]  }
   0x1   :  { %v715_v0 = vld [vmem:[%s1136_s0 + $0x10] sm:$0xff]  ;;  %v720_v1 = vld [vmem:[%s1136_s0] sm:$0xff]  ;;  %v725_v2 = vld [vmem:[%s1136_s0 + $0x18] sm:$0xff]  ;;  %684 = vset.pattern.permute.xlu1 %v685_v3  ;;  %683 = vset.pattern.permute.xlu0 %v685_v3 }
   0x2   :  { %v653_v4 = vtrunc.f32 %v715_v0  ;;  %v649_v5 = vtrunc.f32 %v720_v1  ;;  %v655_v6 = vtrunc.f32 %v725_v2  ;;  %v733_v7 = vld [vmem:[%s1136_s0 + $0x8] sm:$0xff]  ;;  %v744_v10 = vld [vmem:[%s1136_s0 + $0x20] sm:$0xff]  ;;  %v751_v17 = vld [vmem:[%s1136_s0 + $0x38] sm:$0xff]  ;;  %v189_v44 = vshrl.u32 %v49_v37, 7 }
   0x3   :  { %v651_v8 = vtrunc.f32 %v733_v7  ;;  %v739_v9 = vld [vmem:[%s1136_s0 + $0x28] sm:$0xff]  ;;  %v657_v16 = vtrunc.f32 %v744_v10  ;;  %v756_v18 = vld [vmem:[%s1136_s0 + $0x30] sm:$0xff]  ;;  %v663_v21 = vtrunc.f32 %v751_v17  ;;  %v768_v24 = vld [vmem:[%s1136_s0 + $0x40] sm:$0xff] }
   0x4   :  { %v654_v11 = vcvt.f32.s32 %v653_v4  ;;  %v650_v12 = vcvt.f32.s32 %v649_v5  ;;  %v656_v13 = vcvt.f32.s32 %v655_v6  ;;  %v659_v15 = vtrunc.f32 %v739_v9  ;;  %v763_v23 = vld [vmem:[%s1136_s0 + $0x48] sm:$0xff]  ;;  %v775_v29 = vld [vmem:[%s1136_s0 + $0x58] sm:$0xff]  ;;  %v780_v30 = vld [vmem:[%s1136_s0 + $0x50] sm:$0xff] }
   0x5   :  { %v652_v14 = vcvt.f32.s32 %v651_v8  ;;  %v658_v20 = vcvt.f32.s32 %v657_v16  ;;  %v661_v22 = vtrunc.f32 %v756_v18  ;;  %v664_v25 = vcvt.f32.s32 %v663_v21  ;;  %v30_v35 = vld [vmem:[%s1136_s0 + $0x68] sm:$0xff]  ;;  %v790_v36 = vld [vmem:[%s1136_s0 + $0x60] sm:$0xff]  ;;  %v32_v42 = vld [vmem:[%s1136_s0 + $0x78] sm:$0xff] }
   0x6   :  { %58 = vperm.xlu1 %684, %v654_v11   ;;  %52 = vperm.xlu0 %683, %v650_v12   ;;  %v660_v19 = vcvt.f32.s32 %v659_v15  ;;  %v667_v27 = vtrunc.f32 %v763_v23  ;;  %v665_v28 = vtrunc.f32 %v768_v24  ;;  %v671_v33 = vtrunc.f32 %v775_v29  ;;  %v31_v43 = vld [vmem:[%s1136_s0 + $0x70] sm:$0xff]  ;;  %v187_v50 = vld [vmem:[%s1138_s2] sm:$0x3] }
   0x7   :  { %v662_v26 = vcvt.f32.s32 %v661_v22  ;;  %v669_v34 = vtrunc.f32 %v780_v30  ;;  %v675_v40 = vtrunc.f32 %v30_v35  ;;  %v673_v41 = vtrunc.f32 %v790_v36 }
   0x8   :  { %v668_v31 = vcvt.f32.s32 %v667_v27  ;;  %v666_v32 = vcvt.f32.s32 %v665_v28  ;;  %v672_v38 = vcvt.f32.s32 %v671_v33  ;;  %v679_v47 = vtrunc.f32 %v32_v42 }
   0x9   :  { %v670_v39 = vcvt.f32.s32 %v669_v34  ;;  %v676_v45 = vcvt.f32.s32 %v675_v40  ;;  %v674_v46 = vcvt.f32.s32 %v673_v41  ;;  %v677_v48 = vtrunc.f32 %v31_v43 }
   0xa   :  { %61 = vperm.xlu1 %684, %v656_v13   ;;  %55 = vperm.xlu0 %683, %v652_v14   ;;  %v190_v49 = vsub.s32 0, %v189_v44  ;;  %v680_v51 = vcvt.f32.s32 %v679_v47  ;;  %v282_v54 = vsub.s32 1, %v189_v44 }
   0xb   :  { %v678_v52 = vcvt.f32.s32 %v677_v48 }
   0xc   :  { %v191_v53 = vrot.slane %v187_v50, %v190_v49  ;;  %v803_v57 = vrot.slane %v187_v50, %v282_v54 }
   0xe   :  { %67 = vperm.xlu1 %684, %v660_v19   ;;  %64 = vperm.xlu0 %683, %v658_v20   ;;  %v205_v55 = vmul.f32 %v191_v53, %v30_v35  ;;  %v206_v56 = vmul.f32 %v191_v53, %v31_v43  ;;  %v207_v60 = vmul.f32 %v191_v53, %v32_v42 }
   0xf   :  { %v297_v61 = vmul.f32 %v803_v57, %v30_v35  ;;  %v298_v3 = vmul.f32 %v803_v57, %v31_v43  ;;  %v299_v4 = vmul.f32 %v803_v57, %v32_v42  ;;  %v192_v8 = vmul.f32 %v191_v53, %v720_v1 }
  0x10   :  { %v806_v58 = vsel %vm208_vm0, %v205_v55, 0.0  ;;  %v809_v59 = vsel %vm208_vm0, %v206_v56, 0.0  ;;  %v813_v62 = vsel %vm208_vm0, %v207_v60, 0.0  ;;  %v194_v12 = vmul.f32 %v191_v53, %v715_v0 }
  0x11   :  { %v816_v63 = vsel %vm208_vm0, %v297_v61, 0.0  ;;  %v821_v5 = vsel %vm208_vm0, %v298_v3, 0.0  ;;  %v824_v6 = vsel %vm208_vm0, %v299_v4, 0.0  ;;  %v209_v11 = vsel %vm208_vm0, %v192_v8, 0.0 }
  0x12   :  { %73 = vperm.xlu1 %684, %v664_v25   ;;  %70 = vperm.xlu0 %683, %v662_v26   ;;  %v193_v13 = vmul.f32 %v191_v53, %v733_v7  ;;  %v215_v14 = vsel %vm208_vm0, %v194_v12, 0.0  ;;  %v196_v15 = vmul.f32 %v191_v53, %v744_v10  ;;  %v195_v19 = vmul.f32 %v191_v53, %v725_v2 }
  0x13   :  { %v198_v21 = vmul.f32 %v191_v53, %v756_v18  ;;  %v197_v25 = vmul.f32 %v191_v53, %v739_v9  ;;  %v200_v27 = vmul.f32 %v191_v53, %v768_v24  ;;  %v202_v33 = vmul.f32 %v191_v53, %v780_v30 }
  0x14   :  { %v212_v16 = vsel %vm208_vm0, %v193_v13, 0.0  ;;  %v221_v20 = vsel %vm208_vm0, %v196_v15, 0.0  ;;  %v218_v22 = vsel %vm208_vm0, %v195_v19, 0.0  ;;  %v201_v35 = vmul.f32 %v191_v53, %v763_v23 }
  0x15   :  { %v227_v26 = vsel %vm208_vm0, %v198_v21, 0.0  ;;  %v224_v28 = vsel %vm208_vm0, %v197_v25, 0.0  ;;  %v203_v41 = vmul.f32 %v191_v53, %v775_v29  ;;  %v285_v43 = vmul.f32 %v803_v57, %v733_v7 }
  0x16   :  { %79 = vperm.xlu1 %684, %v668_v31   ;;  %76 = vperm.xlu0 %683, %v666_v32   ;;  %v199_v31 = vmul.f32 %v191_v53, %v751_v17  ;;  %v233_v32 = vsel %vm208_vm0, %v200_v27, 0.0  ;;  %v236_v40 = vsel %vm208_vm0, %v201_v35, 0.0  ;;  %v287_v47 = vmul.f32 %v803_v57, %v725_v2 }
  0x17   :  { %v242_v44 = vsel %vm208_vm0, %v203_v41, 0.0  ;;  %v286_v49 = vmul.f32 %v803_v57, %v715_v0  ;;  %v289_v50 = vmul.f32 %v803_v57, %v739_v9  ;;  %v293_v54 = vmul.f32 %v803_v57, %v763_v23 }
  0x18   :  { %v230_v34 = vsel %vm208_vm0, %v199_v31, 0.0  ;;  %v309_v7 = vsel %vm208_vm0, %v287_v47, 0.0  ;;  %v292_v55 = vmul.f32 %v803_v57, %v768_v24  ;;  %v295_v56 = vmul.f32 %v803_v57, %v775_v29 }
  0x19   :  { %v315_v2 = vsel %vm208_vm0, %v289_v50, 0.0  ;;  %v294_v60 = vmul.f32 %v803_v57, %v780_v30  ;;  %v296_v24 = vmul.f32 %v803_v57, %v790_v36  ;;  %v892_v29 = vand.u32 127, %v49_v37  ;;  %v897_v30 = vld [vmem:[%s1137_s1] ss:$0 sm:$0xff] }
  0x1a   :  { %85 = vperm.xlu1 %684, %v672_v38   ;;  %82 = vperm.xlu0 %683, %v670_v39   ;;  %v239_v38 = vsel %vm208_vm0, %v202_v33, 0.0  ;;  %v204_v39 = vmul.f32 %v191_v53, %v790_v36  ;;  %v290_v53 = vmul.f32 %v803_v57, %v756_v18  ;;  %v324_v18 = vsel %vm208_vm0, %v292_v55, 0.0 }
  0x1b   :  { %v333_v23 = vsel %vm208_vm0, %v295_v56, 0.0  ;;  %v330_v61 = vsel %vm208_vm0, %v294_v60, 0.0  ;;  %v336_v3 = vsel %vm208_vm0, %v296_v24, 0.0 }
  0x1c   :  { %v245_v42 = vsel %vm208_vm0, %v204_v39, 0.0 }
  0x1e   :  { %91 = vperm.xlu1 %684, %v676_v45   ;;  %88 = vperm.xlu0 %683, %v674_v46   ;;  %v284_v45 = vmul.f32 %v803_v57, %v720_v1  ;;  %v303_v46 = vsel %vm208_vm0, %v285_v43, 0.0  ;;  %v306_v1 = vsel %vm208_vm0, %v286_v49, 0.0 }
  0x20   :  { %v300_v48 = vsel %vm208_vm0, %v284_v45, 0.0 }
  0x22   :  { %97 = vperm.xlu1 %684, %v680_v51   ;;  %94 = vperm.xlu0 %683, %v678_v52   ;;  %v288_v51 = vmul.f32 %v803_v57, %v744_v10  ;;  %v291_v52 = vmul.f32 %v803_v57, %v751_v17  ;;  %v318_v10 = vsel %vm208_vm0, %v290_v53, 0.0  ;;  %v327_v17 = vsel %vm208_vm0, %v293_v54, 0.0 }
  0x24   :  { %v312_v0 = vsel %vm208_vm0, %v288_v51, 0.0  ;;  %v321_v9 = vsel %vm208_vm0, %v291_v52, 0.0 }
  0x41   :  { %210 = vadd.xlane.f32.xlu0 %v209_v11 }
  0x45   :  { %216 = vadd.xlane.f32.xlu0 %v215_v14 }
  0x46   :  { %213 = vadd.xlane.f32.xlu1 %v212_v16 }
  0x49   :  { %222 = vadd.xlane.f32.xlu0 %v221_v20 }
  0x4a   :  { %219 = vadd.xlane.f32.xlu1 %v218_v22 }
  0x4d   :  { %228 = vadd.xlane.f32.xlu0 %v227_v26 }
  0x4e   :  { %225 = vadd.xlane.f32.xlu1 %v224_v28 }
  0x51   :  { %234 = vadd.xlane.f32.xlu0 %v233_v32 }
  0x52   :  { %231 = vadd.xlane.f32.xlu1 %v230_v34 }
  0x55   :  { %240 = vadd.xlane.f32.xlu0 %v239_v38 }
  0x56   :  { %237 = vadd.xlane.f32.xlu1 %v236_v40 }
  0x59   :  { %246 = vadd.xlane.f32.xlu0 %v245_v42 }
  0x5a   :  { %243 = vadd.xlane.f32.xlu1 %v242_v44 }
  0x5d   :  { %304 = vadd.xlane.f32.xlu0 %v303_v46 }
  0x5e   :  { %301 = vadd.xlane.f32.xlu1 %v300_v48 }
  0x61   :  { %310 = vadd.xlane.f32.xlu0 %v309_v7 }
  0x62   :  { %307 = vadd.xlane.f32.xlu1 %v306_v1 }
  0x65   :  { %316 = vadd.xlane.f32.xlu0 %v315_v2 }
  0x66   :  { %313 = vadd.xlane.f32.xlu1 %v312_v0 }
  0x69   :  { %322 = vadd.xlane.f32.xlu0 %v321_v9 }
  0x6a   :  { %319 = vadd.xlane.f32.xlu1 %v318_v10 }
  0x6d   :  { %328 = vadd.xlane.f32.xlu0 %v327_v17 }
  0x6e   :  { %325 = vadd.xlane.f32.xlu1 %v324_v18 }
  0x71   :  { %334 = vadd.xlane.f32.xlu0 %v333_v23 }
  0x72   :  { %331 = vadd.xlane.f32.xlu1 %v330_v61 }
  0x76   :  { %337 = vadd.xlane.f32.xlu1 %v336_v3 }
  0x85   :  { %v59_v4 = vpop.permute.xlu1 %58  ;;  %v53_v8 = vpop.permute.xlu0 %52 }
  0x86   :  { %vm101_vm2 = vcmp.eq.s32.totalorder %v892_v29, %v59_v4  ;;  %vm99_vm3 = vcmp.eq.s32.totalorder %v892_v29, %v53_v8 }
  0x87   :  { %v122_v36 = vsel %vm99_vm3, %v897_v30, 0.0  ;;  %v124_v57 = vsel %vm101_vm2, %v897_v30, 0.0  ;;  %vm509_vm3 = vcmask 15360  }
  0x88   :  { %v139_v11 = vsel %vm138_vm1, %v122_v36, 0.0  ;;  %v145_v13 = vsel %vm138_vm1, %v124_v57, 0.0 }
  0x89   :  { %v62_v37 = vpop.permute.xlu1 %61  ;;  %140 = vadd.xlane.f32.xlu0 %v139_v11  ;;  %v56_v12 = vpop.permute.xlu0 %55 }
  0x8a   :  { %vm102_vm4 = vcmp.eq.s32.totalorder %v892_v29, %v62_v37  ;;  %vm100_vm5 = vcmp.eq.s32.totalorder %v892_v29, %v56_v12 }
  0x8b   :  { %v123_v14 = vsel %vm100_vm5, %v897_v30, 0.0  ;;  %v125_v20 = vsel %vm102_vm4, %v897_v30, 0.0  ;;  %vm542_vm4 = vcmask 23552  }
  0x8c   :  { %v142_v15 = vsel %vm138_vm1, %v123_v14, 0.0  ;;  %v148_v22 = vsel %vm138_vm1, %v125_v20, 0.0 }
  0x8d   :  { %v68_v16 = vpop.permute.xlu1 %67  ;;  %146 = vadd.xlane.f32.xlu0 %v145_v13  ;;  %143 = vadd.xlane.f32.xlu1 %v142_v15  ;;  %v65_v19 = vpop.permute.xlu0 %64 }
  0x8e   :  { %vm104_vm6 = vcmp.eq.s32.totalorder %v892_v29, %v68_v16  ;;  %vm103_vm7 = vcmp.eq.s32.totalorder %v892_v29, %v65_v19 }
  0x8f   :  { %v126_v21 = vsel %vm103_vm7, %v897_v30, 0.0  ;;  %v127_v28 = vsel %vm104_vm6, %v897_v30, 0.0 }
  0x90   :  { %v151_v25 = vsel %vm138_vm1, %v126_v21, 0.0  ;;  %v154_v32 = vsel %vm138_vm1, %v127_v28, 0.0 }
  0x91   :  { %v74_v26 = vpop.permute.xlu1 %73  ;;  %149 = vadd.xlane.f32.xlu0 %v148_v22  ;;  %152 = vadd.xlane.f32.xlu1 %v151_v25  ;;  %v71_v27 = vpop.permute.xlu0 %70 }
  0x92   :  { %vm106_vm8 = vcmp.eq.s32.totalorder %v892_v29, %v74_v26  ;;  %vm105_vm9 = vcmp.eq.s32.totalorder %v892_v29, %v71_v27 }
  0x93   :  { %v128_v31 = vsel %vm105_vm9, %v897_v30, 0.0  ;;  %v129_v38 = vsel %vm106_vm8, %v897_v30, 0.0 }
  0x94   :  { %v157_v33 = vsel %vm138_vm1, %v128_v31, 0.0  ;;  %v160_v40 = vsel %vm138_vm1, %v129_v38, 0.0 }
  0x95   :  { %v80_v34 = vpop.permute.xlu1 %79  ;;  %155 = vadd.xlane.f32.xlu0 %v154_v32  ;;  %158 = vadd.xlane.f32.xlu1 %v157_v33  ;;  %v77_v35 = vpop.permute.xlu0 %76 }
  0x96   :  { %vm108_vm10 = vcmp.eq.s32.totalorder %v892_v29, %v80_v34  ;;  %vm107_vm11 = vcmp.eq.s32.totalorder %v892_v29, %v77_v35 }
  0x97   :  { %v130_v39 = vsel %vm107_vm11, %v897_v30, 0.0  ;;  %v131_v44 = vsel %vm108_vm10, %v897_v30, 0.0 }
  0x98   :  { %v163_v41 = vsel %vm138_vm1, %v130_v39, 0.0  ;;  %v166_v46 = vsel %vm138_vm1, %v131_v44, 0.0 }
  0x99   :  { %v86_v42 = vpop.permute.xlu1 %85  ;;  %161 = vadd.xlane.f32.xlu0 %v160_v40  ;;  %164 = vadd.xlane.f32.xlu1 %v163_v41  ;;  %v83_v43 = vpop.permute.xlu0 %82 }
  0x9a   :  { %vm110_vm12 = vcmp.eq.s32.totalorder %v892_v29, %v86_v42  ;;  %vm109_vm13 = vcmp.eq.s32.totalorder %v892_v29, %v83_v43 }
  0x9b   :  { %v132_v45 = vsel %vm109_vm13, %v897_v30, 0.0  ;;  %v133_v49 = vsel %vm110_vm12, %v897_v30, 0.0 }
  0x9c   :  { %v169_v47 = vsel %vm138_vm1, %v132_v45, 0.0  ;;  %v172_v50 = vsel %vm138_vm1, %v133_v49, 0.0 }
  0x9d   :  { %167 = vadd.xlane.f32.xlu0 %v166_v46  ;;  %170 = vadd.xlane.f32.xlu1 %v169_v47  ;;  %v89_v48 = vpop.permute.xlu0 %88  ;;  %v92_v51 = vpop.permute.xlu1 %91 }
  0x9e   :  { %vm111_vm14 = vcmp.eq.s32.totalorder %v892_v29, %v89_v48  ;;  %vm112_vm15 = vcmp.eq.s32.totalorder %v892_v29, %v92_v51 }
  0x9f   :  { %v134_v7 = vsel %vm111_vm14, %v897_v30, 0.0  ;;  %v135_v0 = vsel %vm112_vm15, %v897_v30, 0.0 }
  0xa0   :  { %v175_v1 = vsel %vm138_vm1, %v134_v7, 0.0 }
  0xa1   :  { %173 = vadd.xlane.f32.xlu0 %v172_v50  ;;  %176 = vadd.xlane.f32.xlu1 %v175_v1  ;;  %v95_v2 = vpop.permute.xlu0 %94  ;;  %v98_v52 = vpop.permute.xlu1 %97 }
  0xa2   :  { %vm113_vm0 = vcmp.eq.s32.totalorder %v892_v29, %v95_v2  ;;  %vm114_vm2 = vcmp.eq.s32.totalorder %v892_v29, %v98_v52 }
  0xa5   :  { %249 = vadd.xlane.f32.xlu0 %v806_v58  ;;  %252 = vadd.xlane.f32.xlu1 %v809_v59  ;;  %v136_v58 = vsel %vm113_vm0, %v897_v30, 0.0  ;;  %v178_v59 = vsel %vm138_vm1, %v135_v0, 0.0 }
  0xa9   :  { %255 = vadd.xlane.f32.xlu0 %v813_v62  ;;  %340 = vadd.xlane.f32.xlu1 %v816_v63  ;;  %v181_v62 = vsel %vm138_vm1, %v136_v58, 0.0  ;;  %v137_v63 = vsel %vm114_vm2, %v897_v30, 0.0 }
  0xaa   :  { %v184_v53 = vsel %vm138_vm1, %v137_v63, 0.0  ;;  %vm492_vm1 = vcmask 7168  }
  0xad   :  { %343 = vadd.xlane.f32.xlu0 %v821_v5  ;;  %346 = vadd.xlane.f32.xlu1 %v824_v6  ;;  %v956_v5 = vld [vmem:[%s1139_s3] ss:$0 sm:$0xff] }
  0xb1   :  { %179 = vadd.xlane.f32.xlu0 %v178_v59  ;;  %182 = vadd.xlane.f32.xlu1 %v181_v62 }
  0xb5   :  { %185 = vadd.xlane.f32.xlu0 %v184_v53 }
  0xce   :  { %v211_v6 = vpop.xlane.xlu0 %210 }
  0xcf   :  { %v264_v9 = vadd.f32 %v956_v5, %v211_v6 }
  0xd1   :  { %380 = vrot.lane.b32.xlu1 %v264_v9, %s686_s24 }
  0xd2   :  { %v217_v54 = vpop.xlane.xlu0 %216 }
  0xd3   :  { %v266_v10 = vadd.f32 %v956_v5, %v217_v54  ;;  %v214_v55 = vpop.xlane.xlu1 %213 }
  0xd4   :  { %v265_v17 = vadd.f32 %v956_v5, %v214_v55 }
  0xd5   :  { %384 = vrot.lane.b32.xlu1 %v266_v10, %s686_s24 }
  0xd6   :  { %382 = vrot.lane.b32.xlu0 %v265_v17, %s686_s24  ;;  %v223_v56 = vpop.xlane.xlu0 %222 }
  0xd7   :  { %v220_v18 = vpop.xlane.xlu1 %219  ;;  %v268_v60 = vadd.f32 %v956_v5, %v223_v56 }
  0xd8   :  { %v267_v23 = vadd.f32 %v956_v5, %v220_v18 }
  0xda   :  { %386 = vrot.lane.b32.xlu1 %v267_v23, %s686_s24  ;;  %388 = vrot.lane.b32.xlu0 %v268_v60, %s686_s24  ;;  %v229_v61 = vpop.xlane.xlu0 %228 }
  0xdb   :  { %v226_v24 = vpop.xlane.xlu1 %225  ;;  %v270_v3 = vadd.f32 %v956_v5, %v229_v61 }
  0xdc   :  { %v269_v29 = vadd.f32 %v956_v5, %v226_v24 }
  0xde   :  { %390 = vrot.lane.b32.xlu1 %v269_v29, %s686_s24  ;;  %392 = vrot.lane.b32.xlu0 %v270_v3, %s686_s24  ;;  %v235_v30 = vpop.xlane.xlu0 %234 }
  0xdf   :  { %v232_v4 = vpop.xlane.xlu1 %231  ;;  %v272_v8 = vadd.f32 %v956_v5, %v235_v30 }
  0xe0   :  { %v271_v36 = vadd.f32 %v956_v5, %v232_v4 }
  0xe2   :  { %394 = vrot.lane.b32.xlu1 %v271_v36, %s686_s24  ;;  %396 = vrot.lane.b32.xlu0 %v272_v8, %s686_s24  ;;  %v241_v57 = vpop.xlane.xlu0 %240 }
  0xe3   :  { %v238_v11 = vpop.xlane.xlu1 %237  ;;  %v274_v37 = vadd.f32 %v956_v5, %v241_v57 }
  0xe4   :  { %v273_v12 = vadd.f32 %v956_v5, %v238_v11 }
  0xe6   :  { %398 = vrot.lane.b32.xlu1 %v273_v12, %s686_s24  ;;  %400 = vrot.lane.b32.xlu0 %v274_v37, %s686_s24  ;;  %v247_v13 = vpop.xlane.xlu0 %246 }
  0xe7   :  { %v244_v14 = vpop.xlane.xlu1 %243  ;;  %v276_v15 = vadd.f32 %v956_v5, %v247_v13 }
  0xe8   :  { %v275_v16 = vadd.f32 %v956_v5, %v244_v14 }
  0xea   :  { %402 = vrot.lane.b32.xlu1 %v275_v16, %s686_s24  ;;  %404 = vrot.lane.b32.xlu0 %v276_v15, %s686_s24  ;;  %v305_v19 = vpop.xlane.xlu0 %304 }
  0xeb   :  { %v302_v20 = vpop.xlane.xlu1 %301  ;;  %v349_v21 = vadd.f32 %v956_v5, %v305_v19 }
  0xec   :  { %v348_v22 = vadd.f32 %v956_v5, %v302_v20 }
  0xee   :  { %444 = vrot.lane.b32.xlu1 %v348_v22, %s686_s24  ;;  %446 = vrot.lane.b32.xlu0 %v349_v21, %s686_s24  ;;  %v311_v25 = vpop.xlane.xlu0 %310 }
  0xef   :  { %v308_v26 = vpop.xlane.xlu1 %307  ;;  %v351_v27 = vadd.f32 %v956_v5, %v311_v25 }
  0xf0   :  { %v350_v28 = vadd.f32 %v956_v5, %v308_v26 }
  0xf2   :  { %448 = vrot.lane.b32.xlu1 %v350_v28, %s686_s24  ;;  %450 = vrot.lane.b32.xlu0 %v351_v27, %s686_s24  ;;  %v317_v31 = vpop.xlane.xlu0 %316 }
  0xf3   :  { %v314_v32 = vpop.xlane.xlu1 %313  ;;  %v353_v33 = vadd.f32 %v956_v5, %v317_v31 }
  0xf4   :  { %v352_v34 = vadd.f32 %v956_v5, %v314_v32 }
  0xf6   :  { %452 = vrot.lane.b32.xlu1 %v352_v34, %s686_s24  ;;  %454 = vrot.lane.b32.xlu0 %v353_v33, %s686_s24  ;;  %v323_v35 = vpop.xlane.xlu0 %322 }
  0xf7   :  { %v320_v38 = vpop.xlane.xlu1 %319  ;;  %v355_v39 = vadd.f32 %v956_v5, %v323_v35 }
  0xf8   :  { %v354_v40 = vadd.f32 %v956_v5, %v320_v38 }
  0xfa   :  { %456 = vrot.lane.b32.xlu1 %v354_v40, %s686_s24  ;;  %458 = vrot.lane.b32.xlu0 %v355_v39, %s686_s24  ;;  %v329_v41 = vpop.xlane.xlu0 %328 }
  0xfb   :  { %v326_v42 = vpop.xlane.xlu1 %325  ;;  %v357_v43 = vadd.f32 %v956_v5, %v329_v41 }
  0xfc   :  { %v356_v44 = vadd.f32 %v956_v5, %v326_v42 }
  0xfe   :  { %460 = vrot.lane.b32.xlu1 %v356_v44, %s686_s24  ;;  %462 = vrot.lane.b32.xlu0 %v357_v43, %s686_s24  ;;  %v335_v45 = vpop.xlane.xlu0 %334 }
  0xff   :  { %v332_v46 = vpop.xlane.xlu1 %331  ;;  %v359_v47 = vadd.f32 %v956_v5, %v335_v45 }
 0x100   :  { %v358_v48 = vadd.f32 %v956_v5, %v332_v46 }
 0x102   :  { %464 = vrot.lane.b32.xlu1 %v358_v48, %s686_s24  ;;  %466 = vrot.lane.b32.xlu0 %v359_v47, %s686_s24 }
 0x103   :  { %v338_v49 = vpop.xlane.xlu1 %337 }
 0x104   :  { %v360_v7 = vadd.f32 %v956_v5, %v338_v49 }
 0x106   :  { %468 = vrot.lane.b32.xlu1 %v360_v7, %s686_s24 }
 0x116   :  { %v141_v50 = vpop.xlane.xlu0 %140 }
 0x11a   :  { %v144_v1 = vpop.xlane.xlu1 %143  ;;  %v147_v51 = vpop.xlane.xlu0 %146 }
 0x11e   :  { %v1010_v2 = vpop.xlane.xlu1 %152  ;;  %v150_v52 = vpop.xlane.xlu0 %149 }
 0x122   :  { %v1012_v0 = vpop.xlane.xlu1 %158  ;;  %v1014_v58 = vpop.xlane.xlu0 %155 }
 0x126   :  { %v1016_v59 = vpop.xlane.xlu1 %164  ;;  %v1018_v62 = vpop.xlane.xlu0 %161 }
 0x12a   :  { %v1020_v63 = vpop.xlane.xlu1 %170  ;;  %v1022_v53 = vpop.xlane.xlu0 %167 }
 0x12e   :  { %v1024_v6 = vpop.xlane.xlu1 %176  ;;  %v1026_v9 = vpop.xlane.xlu0 %173 }
 0x132   :  { %v253_v54 = vpop.xlane.xlu1 %252  ;;  %v250_v10 = vpop.xlane.xlu0 %249 }
 0x133   :  { %v278_v55 = vadd.f32 %v956_v5, %v253_v54  ;;  %v277_v17 = vadd.f32 %v956_v5, %v250_v10 }
 0x135   :  { %408 = vrot.lane.b32.xlu1 %v278_v55, %s686_s24  ;;  %406 = vrot.lane.b32.xlu0 %v277_v17, %s686_s24 }
 0x136   :  { %v341_v56 = vpop.xlane.xlu1 %340  ;;  %v256_v18 = vpop.xlane.xlu0 %255 }
 0x137   :  { %v361_v60 = vadd.f32 %v956_v5, %v341_v56  ;;  %v279_v23 = vadd.f32 %v956_v5, %v256_v18 }
 0x139   :  { %470 = vrot.lane.b32.xlu1 %v361_v60, %s686_s24  ;;  %410 = vrot.lane.b32.xlu0 %v279_v23, %s686_s24 }
 0x13a   :  { %v347_v61 = vpop.xlane.xlu1 %346  ;;  %v344_v24 = vpop.xlane.xlu0 %343 }
 0x13b   :  { %v363_v3 = vadd.f32 %v956_v5, %v347_v61  ;;  %v362_v29 = vadd.f32 %v956_v5, %v344_v24 }
 0x13d   :  { %474 = vrot.lane.b32.xlu1 %v363_v3, %s686_s24  ;;  %472 = vrot.lane.b32.xlu0 %v362_v29, %s686_s24 }
 0x13e   :  { %v183_v30 = vpop.xlane.xlu1 %182  ;;  %v180_v4 = vpop.xlane.xlu0 %179 }
 0x142   :  { %v186_v36 = vpop.xlane.xlu0 %185 }
 0x143   :  { %v381_v8 = vpop.permute.xlu1 %380 }
 0x144   :  { %v493_v22 = vsel %vm492_vm1, %v141_v50, %v381_v8 }
 0x147   :  { %v385_v57 = vpop.permute.xlu1 %384 }
 0x148   :  { %v383_v11 = vpop.permute.xlu0 %382  ;;  %v495_v34 = vsel %vm492_vm1, %v147_v51, %v385_v57 }
 0x149   :  { %v494_v25 = vsel %vm492_vm1, %v144_v1, %v383_v11 }
 0x14c   :  { %v387_v37 = vpop.permute.xlu1 %386  ;;  %v389_v12 = vpop.permute.xlu0 %388 }
 0x14d   :  { %v496_v35 = vsel %vm492_vm1, %v150_v52, %v387_v37  ;;  %v497_v44 = vsel %vm492_vm1, %v1010_v2, %v389_v12 }
 0x150   :  { %v391_v13 = vpop.permute.xlu1 %390  ;;  %v393_v14 = vpop.permute.xlu0 %392 }
 0x151   :  { %v498_v45 = vsel %vm492_vm1, %v1014_v58, %v391_v13  ;;  %v499_v2 = vsel %vm492_vm1, %v1012_v0, %v393_v14 }
 0x154   :  { %v395_v15 = vpop.permute.xlu1 %394  ;;  %v397_v16 = vpop.permute.xlu0 %396 }
 0x155   :  { %v500_v52 = vsel %vm492_vm1, %v1018_v62, %v395_v15  ;;  %v501_v18 = vsel %vm492_vm1, %v1016_v59, %v397_v16 }
 0x158   :  { %v399_v19 = vpop.permute.xlu1 %398  ;;  %v1040_v20 = vpop.permute.xlu0 %400 }
 0x159   :  { %v502_v60 = vsel %vm492_vm1, %v1022_v53, %v399_v19  ;;  %v503_v4 = vsel %vm492_vm1, %v1020_v63, %v1040_v20 }
 0x15c   :  { %v1042_v5 = vpop.permute.xlu1 %402  ;;  %v1044_v21 = vpop.permute.xlu0 %404 }
 0x15d   :  { %v504_v8 = vsel %vm492_vm1, %v1026_v9, %v1042_v5  ;;  %v505_v14 = vsel %vm492_vm1, %v1024_v6, %v1044_v21 }
 0x160   :  { %v445_v26 = vpop.permute.xlu1 %444  ;;  %v447_v27 = vpop.permute.xlu0 %446 }
 0x161   :  { %v510_v28 = vsel %vm509_vm3, %v493_v22, %v445_v26  ;;  %v511_v31 = vsel %vm509_vm3, %v494_v25, %v447_v27 }
 0x162   :  { %v526_v32 = vand.u32 2147483647, %v510_v28  ;;  %v527_v33 = vand.u32 2147483647, %v511_v31 }
 0x164   :  { %543 = vst.msk [vmem:[#allocation2] sm:$0xff] %vm542_vm4, %v526_v32  ;;  %544 = vst.msk [vmem:[#allocation2 + $0x8] sm:$0xff] %vm542_vm4, %v527_v33  ;;  %v449_v38 = vpop.permute.xlu1 %448  ;;  %v451_v39 = vpop.permute.xlu0 %450 }
 0x165   :  { %v512_v40 = vsel %vm509_vm3, %v495_v34, %v449_v38  ;;  %v513_v41 = vsel %vm509_vm3, %v496_v35, %v451_v39 }
 0x166   :  { %v528_v42 = vand.u32 2147483647, %v512_v40  ;;  %v529_v43 = vand.u32 2147483647, %v513_v41 }
 0x168   :  { %545 = vst.msk [vmem:[#allocation2 + $0x10] sm:$0xff] %vm542_vm4, %v528_v42  ;;  %546 = vst.msk [vmem:[#allocation2 + $0x18] sm:$0xff] %vm542_vm4, %v529_v43  ;;  %v453_v46 = vpop.permute.xlu1 %452  ;;  %v455_v47 = vpop.permute.xlu0 %454 }
 0x169   :  { %v514_v48 = vsel %vm509_vm3, %v497_v44, %v453_v46  ;;  %v515_v49 = vsel %vm509_vm3, %v498_v45, %v455_v47 }
 0x16a   :  { %v530_v7 = vand.u32 2147483647, %v514_v48  ;;  %v531_v50 = vand.u32 2147483647, %v515_v49 }
 0x16b   :  { %v612_v1 = vld [vmem:[#allocation2] sm:$0xff]  ;;  %v614_v51 = vld [vmem:[#allocation2 + $0x8] sm:$0xff] }
 0x16c   :  { %613 = vst [vmem:[%s1140_s4] sm:$0xff] %v612_v1  ;;  %615 = vst [vmem:[%s1140_s4 + $0x8] sm:$0xff] %v614_v51  ;;  %v457_v58 = vpop.permute.xlu1 %456  ;;  %v459_v54 = vpop.permute.xlu0 %458 }
 0x16d   :  { %547 = vst.msk [vmem:[#allocation2 + $0x20] sm:$0xff] %vm542_vm4, %v530_v7  ;;  %548 = vst.msk [vmem:[#allocation2 + $0x28] sm:$0xff] %vm542_vm4, %v531_v50  ;;  %v516_v10 = vsel %vm509_vm3, %v499_v2, %v457_v58  ;;  %v517_v0 = vsel %vm509_vm3, %v500_v52, %v459_v54 }
 0x16e   :  { %v532_v55 = vand.u32 2147483647, %v516_v10  ;;  %v533_v62 = vand.u32 2147483647, %v517_v0 }
 0x16f   :  { %v616_v17 = vld [vmem:[#allocation2 + $0x10] sm:$0xff]  ;;  %v618_v56 = vld [vmem:[#allocation2 + $0x18] sm:$0xff] }
 0x170   :  { %617 = vst [vmem:[%s1140_s4 + $0x10] sm:$0xff] %v616_v17  ;;  %619 = vst [vmem:[%s1140_s4 + $0x18] sm:$0xff] %v618_v56  ;;  %v461_v23 = vpop.permute.xlu1 %460  ;;  %v463_v61 = vpop.permute.xlu0 %462 }
 0x171   :  { %549 = vst.msk [vmem:[#allocation2 + $0x30] sm:$0xff] %vm542_vm4, %v532_v55  ;;  %550 = vst.msk [vmem:[#allocation2 + $0x38] sm:$0xff] %vm542_vm4, %v533_v62  ;;  %v518_v24 = vsel %vm509_vm3, %v501_v18, %v461_v23  ;;  %v519_v59 = vsel %vm509_vm3, %v502_v60, %v463_v61 }
 0x172   :  { %v534_v3 = vand.u32 2147483647, %v518_v24  ;;  %v535_v53 = vand.u32 2147483647, %v519_v59 }
 0x174   :  { %v620_v29 = vld [vmem:[#allocation2 + $0x20] sm:$0xff]  ;;  %v622_v30 = vld [vmem:[#allocation2 + $0x28] sm:$0xff]  ;;  %551 = vst.msk [vmem:[#allocation2 + $0x40] sm:$0xff] %vm542_vm4, %v534_v3  ;;  %552 = vst.msk [vmem:[#allocation2 + $0x48] sm:$0xff] %vm542_vm4, %v535_v53  ;;  %v465_v36 = vpop.permute.xlu1 %464  ;;  %v467_v57 = vpop.permute.xlu0 %466 }
 0x175   :  { %621 = vst [vmem:[%s1140_s4 + $0x20] sm:$0xff] %v620_v29  ;;  %623 = vst [vmem:[%s1140_s4 + $0x28] sm:$0xff] %v622_v30  ;;  %v520_v63 = vsel %vm509_vm3, %v503_v4, %v465_v36  ;;  %v521_v11 = vsel %vm509_vm3, %v504_v8, %v467_v57 }
 0x176   :  { %v536_v37 = vand.u32 2147483647, %v520_v63  ;;  %v537_v9 = vand.u32 2147483647, %v521_v11 }
 0x178   :  { %v624_v12 = vld [vmem:[#allocation2 + $0x30] sm:$0xff]  ;;  %v626_v13 = vld [vmem:[#allocation2 + $0x38] sm:$0xff]  ;;  %553 = vst.msk [vmem:[#allocation2 + $0x50] sm:$0xff] %vm542_vm4, %v536_v37  ;;  %554 = vst.msk [vmem:[#allocation2 + $0x58] sm:$0xff] %vm542_vm4, %v537_v9  ;;  %v469_v15 = vpop.permute.xlu1 %468 }
 0x179   :  { %625 = vst [vmem:[%s1140_s4 + $0x30] sm:$0xff] %v624_v12  ;;  %627 = vst [vmem:[%s1140_s4 + $0x38] sm:$0xff] %v626_v13  ;;  %v522_v16 = vsel %vm509_vm3, %v505_v14, %v469_v15 }
 0x17a   :  { %v538_v19 = vand.u32 2147483647, %v522_v16 }
 0x17b   :  { %v628_v20 = vld [vmem:[#allocation2 + $0x40] sm:$0xff]  ;;  %v630_v5 = vld [vmem:[#allocation2 + $0x48] sm:$0xff] }
 0x17c   :  { %629 = vst [vmem:[%s1140_s4 + $0x40] sm:$0xff] %v628_v20  ;;  %631 = vst [vmem:[%s1140_s4 + $0x48] sm:$0xff] %v630_v5 }
 0x17d   :  { %555 = vst.msk [vmem:[#allocation2 + $0x60] sm:$0xff] %vm542_vm4, %v538_v19 }
 0x17f   :  { %v632_v6 = vld [vmem:[#allocation2 + $0x50] sm:$0xff]  ;;  %v634_v21 = vld [vmem:[#allocation2 + $0x58] sm:$0xff] }
 0x180   :  { %633 = vst [vmem:[%s1140_s4 + $0x50] sm:$0xff] %v632_v6  ;;  %635 = vst [vmem:[%s1140_s4 + $0x58] sm:$0xff] %v634_v21 }
 0x184   :  { %v636_v22 = vld [vmem:[#allocation2 + $0x60] sm:$0xff] }
 0x185   :  { %637 = vst [vmem:[%s1140_s4 + $0x60] sm:$0xff] %v636_v22 }
 0x1a7   :  { %v409_v25 = vpop.permute.xlu1 %408  ;;  %v407_v26 = vpop.permute.xlu0 %406 }
 0x1ab   :  { %v471_v27 = vpop.permute.xlu1 %470  ;;  %v411_v28 = vpop.permute.xlu0 %410 }
 0x1af   :  { %v475_v31 = vpop.permute.xlu1 %474  ;;  %v473_v32 = vpop.permute.xlu0 %472 }

</bundles_post_ra>
